<compile_context>
chip_gen: v5e
topology: v5e:2x2
jax: 0.10.0
libtpu: 0.0.40
codegen_flags: <defaults>
</compile_context>

<pallas_src>
import jax
import jax.numpy as jnp
from jax import lax
from jax.experimental import pallas as pl
from jax.experimental.pallas import tpu as pltpu


# ----------------------------- fused kernel --------------------------------

def make_aspp_kernel(NB, HW, C, n_a, n_b):
    """Fused ASPP kernel; one grid step processes NB whole images (M=NB*HW rows).

    n_a: number of centre-tap-only spatial branches folded into one K=Cin dot.
    n_b: number of multi-tap dilated branches, each with its own im2col slab.
    """
    f32 = jnp.float32
    bf16 = jnp.bfloat16

    def kernel(*refs):
        idx = 0
        x_ref = refs[idx]; idx += 1                         # (M, Cin) bf16
        pb_refs = refs[idx:idx + n_b]; idx += n_b           # (M, Kp) bf16 each
        wa_ref, ba_ref = refs[idx], refs[idx + 1]; idx += 2 # (Cin, n_a*C), (1, n_a*C)
        wb_refs = refs[idx:idx + 2 * n_b]; idx += 2 * n_b   # [(Kp, C), (1, C)] * n_b
        wg_ref, bg_ref = refs[idx], refs[idx + 1]; idx += 2 # (Cin, C), (1, C) f32
        wfs_ref, bff_ref = refs[idx], refs[idx + 1]; idx += 2  # (4C, C) bf16, (1, C)
        wfg_ref = refs[idx]; idx += 1                       # (C, C) f32
        o_ref = refs[idx]                                   # (M, C) f32

        x = x_ref[...]                                      # (M, Cin) bf16

        # All centre-tap-only branches in one K=Cin matmul (bf16 -> f32 acc).
        act_a = jnp.maximum(
            jnp.dot(x, wa_ref[...], preferred_element_type=f32)
            + ba_ref[...], 0.0)                             # (M, n_a*C) f32

        # One aligned, K=128-padded im2col matmul per multi-tap dilated branch.
        acts = [act_a.astype(bf16)]
        for t in range(n_b):
            pre = jnp.dot(pb_refs[t][...], wb_refs[2 * t][...],
                          preferred_element_type=f32) + wb_refs[2 * t + 1][...]
            acts.append(jnp.maximum(pre, 0.0).astype(bf16))

        # Single wide-K fuse GEMM over the (128-aligned) concatenated branches.
        cat = jnp.concatenate(acts, axis=-1)                # (M, 4C) bf16
        acc = jnp.dot(cat, wfs_ref[...], preferred_element_type=f32)  # (M, C)

        # GAP branch per image (spatially constant -> broadcast add), final
        # bias + ReLU, lane-dense (HW, 128) stores.
        for b in range(NB):
            r0 = b * HW
            xm = jnp.mean(x[r0:r0 + HW, :].astype(f32), axis=0, keepdims=True)
            x5 = jnp.maximum(
                jnp.dot(xm, wg_ref[...], preferred_element_type=f32)
                + bg_ref[...], 0.0)                         # (1, C)
            gap = jnp.dot(x5, wfg_ref[...], preferred_element_type=f32)
            o_ref[r0:r0 + HW, :] = jnp.maximum(
                acc[r0:r0 + HW, :] + gap + bff_ref[...], 0.0)

    return kernel


# ----------------------------- wrapper --------------------------------------

def aspp_forward(x_nhwc, params, dilations, *, num_row_blocks=2):
    (w1, s1, b1), (w2, s2, b2), (w3, s3, b3), (w4, s4, b4), \
        (wg, sg, bg), (wf, sf, bf) = params
    N, H, W, Cin = x_nhwc.shape
    C = w1.shape[1]
    HW = H * W
    f32, bf16 = jnp.float32, jnp.bfloat16

    # Trace-time tap elision: a tap is all-zero iff it reads only padding.
    def taps_for(d):
        return [(ky, kx) for ky in range(3) for kx in range(3)
                if (ky == 1 or d < H) and (kx == 1 or d < W)]

    # Per spatial branch: (orig_index, tap offsets, folded per-tap weights, bias).
    branches = [(0, [(0, 0)], [w1 * s1[None, :]], b1)]
    for orig, (d, w3x3, s, b) in enumerate(
            [(dilations[1], w2, s2, b2),
             (dilations[2], w3, s3, b3),
             (dilations[3], w4, s4, b4)], start=1):
        taps = taps_for(d)
        offs = [((ky - 1) * d, (kx - 1) * d) for (ky, kx) in taps]
        tws = [w3x3[ky, kx] * s[None, :] for (ky, kx) in taps]
        branches.append((orig, offs, tws, b))

    group_a = [br for br in branches if len(br[1]) == 1]    # centre-tap only
    group_b = [br for br in branches if len(br[1]) > 1]     # need im2col
    n_a, n_b = len(group_a), len(group_b)
    order = [br[0] for br in group_a] + [br[0] for br in group_b]

    # Group A: one K=Cin matmul covering all centre-tap branches.
    wA = jnp.concatenate([br[2][0] for br in group_a], axis=1).astype(bf16)
    bA = jnp.concatenate([br[3] for br in group_a]).reshape(1, n_a * C)

    # Group B: wrapper-side im2col, K zero-padded to a multiple of 128.
    xb = x_nhwc.astype(bf16)
    pad_y = max([abs(dy) for br in group_b for (dy, _) in br[1]], default=0)
    pad_x = max([abs(dx) for br in group_b for (_, dx) in br[1]], default=0)
    xp = jnp.pad(xb, ((0, 0), (pad_y, pad_y), (pad_x, pad_x), (0, 0)))

    slabs, wBs, bBs = [], [], []
    for (_, offs, tws, b) in group_b:
        cols = [xp[:, pad_y + dy:pad_y + dy + H, pad_x + dx:pad_x + dx + W, :]
                for (dy, dx) in offs]
        slab = jnp.concatenate(cols, axis=-1)               # (N, H, W, Kb)
        wB = jnp.concatenate(tws, axis=0)                   # (Kb, C)
        Kb = slab.shape[-1]
        Kp = ((Kb + 127) // 128) * 128
        slab = jnp.pad(slab, ((0, 0), (0, 0), (0, 0), (0, Kp - Kb)))
        wB = jnp.pad(wB, ((0, Kp - Kb), (0, 0)))
        slabs.append(slab.reshape(N * HW, Kp))
        wBs.append(wB.astype(bf16))
        bBs.append(b.reshape(1, C))

    # GAP branch (tiny; kept f32) and the fused 1x1 conv (BN scale folded).
    wg_f = (wg * sg[None, :]).astype(f32)
    bg_r = bg.reshape(1, C)
    wf_f = wf * sf[None, :]                                 # (5C, C)
    wf_sp = jnp.concatenate([wf_f[i * C:(i + 1) * C] for i in order],
                            axis=0).astype(bf16)            # (4C, C), reordered
    wf_gap = wf_f[4 * C:5 * C].astype(f32)                  # (C, C)
    bf_r = bf.reshape(1, C)

    x_flat = xb.reshape(N * HW, Cin)                        # (N*HW, Cin) bf16

    # Grid: blocks of whole images (so the per-image GAP mean stays exact).
    # Default 2 blocks keeps both v7x TensorCores busy; 1 block minimizes
    # grid-step overhead on single-TC v5e/v6e.
    G = num_row_blocks if (num_row_blocks > 1 and N % num_row_blocks == 0) else 1
    NB = N // G
    M = NB * HW

    kernel = make_aspp_kernel(NB, HW, C, n_a, n_b)

    def row_spec(k):
        return pl.BlockSpec((M, k), lambda g: (g, 0))

    def full_spec(a):
        return pl.BlockSpec(a.shape, lambda g: (0,) * a.ndim)

    weight_args = [wA, bA]
    for wB, bB in zip(wBs, bBs):
        weight_args += [wB, bB]
    weight_args += [wg_f, bg_r, wf_sp, bf_r, wf_gap]

    in_specs = ([row_spec(Cin)]
                + [row_spec(s.shape[-1]) for s in slabs]
                + [full_spec(a) for a in weight_args])

    out_flat = pl.pallas_call(
        kernel,
        out_shape=jax.ShapeDtypeStruct((N * HW, C), jnp.float32),
        grid=(G,),
        in_specs=in_specs,
        out_specs=pl.BlockSpec((M, C), lambda g: (g, 0)),
        compiler_params=pltpu.CompilerParams(
            dimension_semantics=("parallel",),
            vmem_limit_bytes=32 * 1024 * 1024),
    )(x_flat, *slabs, *weight_args)

    return out_flat.reshape(N, H, W, C)


# ----------------------------- pure-JAX reference --------------------------

def ref_forward(x, params, dilations):
    (w1, s1, b1), (w2, s2, b2), (w3, s3, b3), (w4, s4, b4), \
        (wg, sg, bg), (wf, sf, bf) = params

    def bn_relu(y, s, b):
        return jnp.maximum(y * s + b, 0.0)

    def conv(xx, w_hwio, dil):
        pad = (w_hwio.shape[0] // 2) * dil
        return lax.conv_general_dilated(
            xx, w_hwio, (1, 1), [(pad, pad), (pad, pad)],
            rhs_dilation=(dil, dil),
            dimension_numbers=('NHWC', 'HWIO', 'NHWC'))

    N, H, W, Cin = x.shape
    x1 = bn_relu(conv(x, w1.reshape(1, 1, *w1.shape), 1), s1, b1)
    x2 = bn_relu(conv(x, w2, dilations[1]), s2, b2)
    x3 = bn_relu(conv(x, w3, dilations[2]), s3, b3)
    x4 = bn_relu(conv(x, w4, dilations[3]), s4, b4)
    gm = jnp.mean(x, axis=(1, 2), keepdims=True)
    x5 = bn_relu(conv(gm, wg.reshape(1, 1, *wg.shape), 1), sg, bg)
    x5 = jnp.broadcast_to(x5, (N, H, W, x5.shape[-1]))  # bilinear from 1x1
    cat = jnp.concatenate([x1, x2, x3, x4, x5], axis=-1)
    out = bn_relu(conv(cat, wf.reshape(1, 1, *wf.shape), 1), sf, bf)
    return out


# ----------------------------- main ----------------------------------------

if __name__ == "__main__":
    key = jax.random.PRNGKey(0)
    N, Cin, H, W = 2, 8, 16, 16
    C = 128                      # mask_channels (kept small vs. default 256)
    dilations = [1, 6, 12, 18]   # output_stride == 16

    keys = jax.random.split(key, 14)
    x_nchw = jax.random.normal(keys[0], (N, Cin, H, W), jnp.float32)
    x = jnp.transpose(x_nchw, (0, 2, 3, 1))  # -> NHWC

    def bn_params(k, c, eps=1e-5):
        k1, k2, k3, k4 = jax.random.split(k, 4)
        gamma = 1.0 + 0.1 * jax.random.normal(k1, (c,), jnp.float32)
        beta = 0.1 * jax.random.normal(k2, (c,), jnp.float32)
        mean = 0.1 * jax.random.normal(k3, (c,), jnp.float32)
        var = jnp.abs(jax.random.normal(k4, (c,), jnp.float32)) + 0.5
        scale = gamma / jnp.sqrt(var + eps)
        bias = beta - mean * scale
        return scale, bias

    w1 = 0.1 * jax.random.normal(keys[1], (Cin, C), jnp.float32)          # aspp1 1x1
    w2 = 0.1 * jax.random.normal(keys[2], (3, 3, Cin, C), jnp.float32)    # aspp2 3x3 d=6
    w3 = 0.1 * jax.random.normal(keys[3], (3, 3, Cin, C), jnp.float32)    # aspp3 3x3 d=12
    w4 = 0.1 * jax.random.normal(keys[4], (3, 3, Cin, C), jnp.float32)    # aspp4 3x3 d=18
    wg = 0.1 * jax.random.normal(keys[5], (Cin, C), jnp.float32)          # GAP branch 1x1
    wf = 0.1 * jax.random.normal(keys[6], (5 * C, C), jnp.float32)        # final 1x1

    s1, b1 = bn_params(keys[7], C)
    s2, b2 = bn_params(keys[8], C)
    s3, b3 = bn_params(keys[9], C)
    s4, b4 = bn_params(keys[10], C)
    sg, bg = bn_params(keys[11], C)
    sf, bf = bn_params(keys[12], C)

    params = ((w1, s1, b1), (w2, s2, b2), (w3, s3, b3), (w4, s4, b4),
              (wg, sg, bg), (wf, sf, bf))

    aspp_fn = jax.jit(lambda xx, pp: aspp_forward(xx, pp, dilations))
    out = jax.block_until_ready(aspp_fn(x, params))
    ref = jax.block_until_ready(ref_forward(x, params, dilations))

    assert out.shape == (N, H, W, C), out.shape
    # Tolerance widened vs. the f32 version: bf16 MXU inputs (f32 accumulation)
    # bound the error well below 5e-2 at these O(1) magnitudes, while any
    # structural bug (tap offsets, weight ordering, BN folding) shows up as
    # O(0.3..1) errors and still trips this check.
    err = float(jnp.max(jnp.abs(out - ref)))
    assert err < 5e-2, f"max abs err {err}"
    print("KERNEL_OK")
</pallas_src>

<mosaic_0001>
module attributes {stable_mosaic.version = 11 : i64} {
  func.func @kernel(%arg0: i32, %arg1: memref<256x8xbf16, #tpu.memory_space<vmem>>, %arg2: memref<256x128xbf16, #tpu.memory_space<vmem>>, %arg3: memref<256x128xbf16, #tpu.memory_space<vmem>>, %arg4: memref<8x256xbf16, #tpu.memory_space<vmem>>, %arg5: memref<1x256xf32, #tpu.memory_space<vmem>>, %arg6: memref<128x128xbf16, #tpu.memory_space<vmem>>, %arg7: memref<1x128xf32, #tpu.memory_space<vmem>>, %arg8: memref<128x128xbf16, #tpu.memory_space<vmem>>, %arg9: memref<1x128xf32, #tpu.memory_space<vmem>>, %arg10: memref<8x128xf32, #tpu.memory_space<vmem>>, %arg11: memref<1x128xf32, #tpu.memory_space<vmem>>, %arg12: memref<512x128xbf16, #tpu.memory_space<vmem>>, %arg13: memref<1x128xf32, #tpu.memory_space<vmem>>, %arg14: memref<128x128xf32, #tpu.memory_space<vmem>>, %arg15: memref<256x128xf32, #tpu.memory_space<vmem>>) attributes {dimension_semantics = [#tpu.dimension_semantics<parallel>], iteration_bounds = array<i64: 2>, scalar_prefetch = 0 : i64, scratch_operands = 0 : i64, tpu.core_type = #tpu.core_type<tc>, window_params = [{transform_indices = @transform_0, window_bounds = array<i64: 256, 8>}, {transform_indices = @transform_1, window_bounds = array<i64: 256, 128>}, {transform_indices = @transform_2, window_bounds = array<i64: 256, 128>}, {pipeline_mode = #tpu.pipeline_mode<synchronous>, transform_indices = @transform_3, window_bounds = array<i64: 8, 256>}, {pipeline_mode = #tpu.pipeline_mode<synchronous>, transform_indices = @transform_4, window_bounds = array<i64: 1, 256>}, {pipeline_mode = #tpu.pipeline_mode<synchronous>, transform_indices = @transform_5, window_bounds = array<i64: 128, 128>}, {pipeline_mode = #tpu.pipeline_mode<synchronous>, transform_indices = @transform_6, window_bounds = array<i64: 1, 128>}, {pipeline_mode = #tpu.pipeline_mode<synchronous>, transform_indices = @transform_7, window_bounds = array<i64: 128, 128>}, {pipeline_mode = #tpu.pipeline_mode<synchronous>, transform_indices = @transform_8, window_bounds = array<i64: 1, 128>}, {pipeline_mode = #tpu.pipeline_mode<synchronous>, transform_indices = @transform_9, window_bounds = array<i64: 8, 128>}, {pipeline_mode = #tpu.pipeline_mode<synchronous>, transform_indices = @transform_10, window_bounds = array<i64: 1, 128>}, {pipeline_mode = #tpu.pipeline_mode<synchronous>, transform_indices = @transform_11, window_bounds = array<i64: 512, 128>}, {pipeline_mode = #tpu.pipeline_mode<synchronous>, transform_indices = @transform_12, window_bounds = array<i64: 1, 128>}, {pipeline_mode = #tpu.pipeline_mode<synchronous>, transform_indices = @transform_13, window_bounds = array<i64: 128, 128>}, {transform_indices = @transform_14, window_bounds = array<i64: 256, 128>}]} {
    %c0 = arith.constant 0 : index
    %c0_0 = arith.constant 0 : index
    %0 = vector.load %arg1[%c0, %c0_0] : memref<256x8xbf16, #tpu.memory_space<vmem>>, vector<256x8xbf16>
    %c0_1 = arith.constant 0 : index
    %c0_2 = arith.constant 0 : index
    %1 = vector.load %arg4[%c0_1, %c0_2] : memref<8x256xbf16, #tpu.memory_space<vmem>>, vector<8x256xbf16>
    %cst = arith.constant dense<0.000000e+00> : vector<256x256xf32>
    %2 = tpu.matmul %0, %1, %cst {dimension_numbers = #tpu.dot_dimension_numbers<[1], [0], [0], [1], [0, 0, 1, 1], [], []>} : vector<256x8xbf16>, vector<8x256xbf16>, vector<256x256xf32> -> vector<256x256xf32>
    %c0_3 = arith.constant 0 : index
    %c0_4 = arith.constant 0 : index
    %3 = vector.load %arg5[%c0_3, %c0_4] : memref<1x256xf32, #tpu.memory_space<vmem>>, vector<1x256xf32>
    %4 = vector.broadcast %3 : vector<1x256xf32> to vector<256x256xf32>
    %5 = arith.addf %2, %4 : vector<256x256xf32>
    %cst_5 = arith.constant 0.000000e+00 : f32
    %6 = vector.broadcast %cst_5 : f32 to vector<256x256xf32>
    %7 = arith.maximumf %5, %6 : vector<256x256xf32>
    %8 = arith.truncf %7 : vector<256x256xf32> to vector<256x256xbf16>
    %c0_6 = arith.constant 0 : index
    %c0_7 = arith.constant 0 : index
    %9 = vector.load %arg2[%c0_6, %c0_7] : memref<256x128xbf16, #tpu.memory_space<vmem>>, vector<256x128xbf16>
    %c0_8 = arith.constant 0 : index
    %c0_9 = arith.constant 0 : index
    %10 = vector.load %arg6[%c0_8, %c0_9] : memref<128x128xbf16, #tpu.memory_space<vmem>>, vector<128x128xbf16>
    %cst_10 = arith.constant dense<0.000000e+00> : vector<256x128xf32>
    %11 = tpu.matmul %9, %10, %cst_10 {dimension_numbers = #tpu.dot_dimension_numbers<[1], [0], [0], [1], [0, 0, 1, 1], [], []>} : vector<256x128xbf16>, vector<128x128xbf16>, vector<256x128xf32> -> vector<256x128xf32>
    %c0_11 = arith.constant 0 : index
    %c0_12 = arith.constant 0 : index
    %12 = vector.load %arg7[%c0_11, %c0_12] : memref<1x128xf32, #tpu.memory_space<vmem>>, vector<1x128xf32>
    %13 = vector.broadcast %12 : vector<1x128xf32> to vector<256x128xf32>
    %14 = arith.addf %11, %13 : vector<256x128xf32>
    %cst_13 = arith.constant 0.000000e+00 : f32
    %15 = vector.broadcast %cst_13 : f32 to vector<256x128xf32>
    %16 = arith.maximumf %14, %15 : vector<256x128xf32>
    %17 = arith.truncf %16 : vector<256x128xf32> to vector<256x128xbf16>
    %c0_14 = arith.constant 0 : index
    %c0_15 = arith.constant 0 : index
    %18 = vector.load %arg3[%c0_14, %c0_15] : memref<256x128xbf16, #tpu.memory_space<vmem>>, vector<256x128xbf16>
    %c0_16 = arith.constant 0 : index
    %c0_17 = arith.constant 0 : index
    %19 = vector.load %arg8[%c0_16, %c0_17] : memref<128x128xbf16, #tpu.memory_space<vmem>>, vector<128x128xbf16>
    %cst_18 = arith.constant dense<0.000000e+00> : vector<256x128xf32>
    %20 = tpu.matmul %18, %19, %cst_18 {dimension_numbers = #tpu.dot_dimension_numbers<[1], [0], [0], [1], [0, 0, 1, 1], [], []>} : vector<256x128xbf16>, vector<128x128xbf16>, vector<256x128xf32> -> vector<256x128xf32>
    %c0_19 = arith.constant 0 : index
    %c0_20 = arith.constant 0 : index
    %21 = vector.load %arg9[%c0_19, %c0_20] : memref<1x128xf32, #tpu.memory_space<vmem>>, vector<1x128xf32>
    %22 = vector.broadcast %21 : vector<1x128xf32> to vector<256x128xf32>
    %23 = arith.addf %20, %22 : vector<256x128xf32>
    %cst_21 = arith.constant 0.000000e+00 : f32
    %24 = vector.broadcast %cst_21 : f32 to vector<256x128xf32>
    %25 = arith.maximumf %23, %24 : vector<256x128xf32>
    %26 = arith.truncf %25 : vector<256x128xf32> to vector<256x128xbf16>
    %27 = tpu.concatenate %8, %17, %26 in 1 : vector<256x256xbf16>, vector<256x128xbf16>, vector<256x128xbf16> -> vector<256x512xbf16>
    %c0_22 = arith.constant 0 : index
    %c0_23 = arith.constant 0 : index
    %28 = vector.load %arg12[%c0_22, %c0_23] : memref<512x128xbf16, #tpu.memory_space<vmem>>, vector<512x128xbf16>
    %cst_24 = arith.constant dense<0.000000e+00> : vector<256x128xf32>
    %29 = tpu.matmul %27, %28, %cst_24 {dimension_numbers = #tpu.dot_dimension_numbers<[1], [0], [0], [1], [0, 0, 1, 1], [], []>} : vector<256x512xbf16>, vector<512x128xbf16>, vector<256x128xf32> -> vector<256x128xf32>
    %30 = arith.extf %0 : vector<256x8xbf16> to vector<256x8xf32>
    %cst_25 = arith.constant dense<0.000000e+00> : vector<8xf32>
    %31 = vector.multi_reduction <add>, %30, %cst_25 [0] : vector<256x8xf32> to vector<8xf32>
    %32 = vector.shape_cast %31 : vector<8xf32> to vector<1x8xf32>
    %cst_26 = arith.constant 2.560000e+02 : f32
    %33 = vector.broadcast %cst_26 : f32 to vector<1x8xf32>
    %34 = arith.divf %32, %33 : vector<1x8xf32>
    %c0_27 = arith.constant 0 : index
    %c0_28 = arith.constant 0 : index
    %35 = vector.load %arg10[%c0_27, %c0_28] : memref<8x128xf32, #tpu.memory_space<vmem>>, vector<8x128xf32>
    %cst_29 = arith.constant dense<0.000000e+00> : vector<1x128xf32>
    %36 = tpu.matmul %34, %35, %cst_29 {dimension_numbers = #tpu.dot_dimension_numbers<[1], [0], [0], [1], [0, 0, 1, 1], [], []>} : vector<1x8xf32>, vector<8x128xf32>, vector<1x128xf32> -> vector<1x128xf32>
    %c0_30 = arith.constant 0 : index
    %c0_31 = arith.constant 0 : index
    %37 = vector.load %arg11[%c0_30, %c0_31] : memref<1x128xf32, #tpu.memory_space<vmem>>, vector<1x128xf32>
    %38 = arith.addf %36, %37 : vector<1x128xf32>
    %cst_32 = arith.constant 0.000000e+00 : f32
    %39 = vector.broadcast %cst_32 : f32 to vector<1x128xf32>
    %40 = arith.maximumf %38, %39 : vector<1x128xf32>
    %c0_33 = arith.constant 0 : index
    %c0_34 = arith.constant 0 : index
    %41 = vector.load %arg14[%c0_33, %c0_34] : memref<128x128xf32, #tpu.memory_space<vmem>>, vector<128x128xf32>
    %cst_35 = arith.constant dense<0.000000e+00> : vector<1x128xf32>
    %42 = tpu.matmul %40, %41, %cst_35 {dimension_numbers = #tpu.dot_dimension_numbers<[1], [0], [0], [1], [0, 0, 1, 1], [], []>} : vector<1x128xf32>, vector<128x128xf32>, vector<1x128xf32> -> vector<1x128xf32>
    %43 = vector.broadcast %42 : vector<1x128xf32> to vector<256x128xf32>
    %44 = arith.addf %29, %43 : vector<256x128xf32>
    %c0_36 = arith.constant 0 : index
    %c0_37 = arith.constant 0 : index
    %45 = vector.load %arg13[%c0_36, %c0_37] : memref<1x128xf32, #tpu.memory_space<vmem>>, vector<1x128xf32>
    %46 = vector.broadcast %45 : vector<1x128xf32> to vector<256x128xf32>
    %47 = arith.addf %44, %46 : vector<256x128xf32>
    %cst_38 = arith.constant 0.000000e+00 : f32
    %48 = vector.broadcast %cst_38 : f32 to vector<256x128xf32>
    %49 = arith.maximumf %47, %48 : vector<256x128xf32>
    %c0_39 = arith.constant 0 : index
    %c0_40 = arith.constant 0 : index
    %50 = vector.load %arg15[%c0_39, %c0_40] : memref<256x128xf32, #tpu.memory_space<vmem>>, vector<256x128xf32>
    tpu.vector_store %arg15[%c0_39, %c0_40], %49 {strides = array<i32>} : memref<256x128xf32, #tpu.memory_space<vmem>>, vector<256x128xf32>,
    return
  }
  func.func @transform_0(%arg0: i32) -> (i32, i32) {
    %c0_i32 = arith.constant 0 : i32
    %c0_i32_0 = arith.constant 0 : i32
    return %arg0, %c0_i32 : i32, i32
  }
  func.func @transform_1(%arg0: i32) -> (i32, i32) {
    %c0_i32 = arith.constant 0 : i32
    %c0_i32_0 = arith.constant 0 : i32
    return %arg0, %c0_i32 : i32, i32
  }
  func.func @transform_2(%arg0: i32) -> (i32, i32) {
    %c0_i32 = arith.constant 0 : i32
    %c0_i32_0 = arith.constant 0 : i32
    return %arg0, %c0_i32 : i32, i32
  }
  func.func @transform_3(%arg0: i32) -> (i32, i32) {
    %c0_i32 = arith.constant 0 : i32
    %c0_i32_0 = arith.constant 0 : i32
    %c0_i32_1 = arith.constant 0 : i32
    return %c0_i32, %c0_i32_0 : i32, i32
  }
  func.func @transform_4(%arg0: i32) -> (i32, i32) {
    %c0_i32 = arith.constant 0 : i32
    %c0_i32_0 = arith.constant 0 : i32
    %c0_i32_1 = arith.constant 0 : i32
    return %c0_i32, %c0_i32_0 : i32, i32
  }
  func.func @transform_5(%arg0: i32) -> (i32, i32) {
    %c0_i32 = arith.constant 0 : i32
    %c0_i32_0 = arith.constant 0 : i32
    %c0_i32_1 = arith.constant 0 : i32
    return %c0_i32, %c0_i32_0 : i32, i32
  }
  func.func @transform_6(%arg0: i32) -> (i32, i32) {
    %c0_i32 = arith.constant 0 : i32
    %c0_i32_0 = arith.constant 0 : i32
    %c0_i32_1 = arith.constant 0 : i32
    return %c0_i32, %c0_i32_0 : i32, i32
  }
  func.func @transform_7(%arg0: i32) -> (i32, i32) {
    %c0_i32 = arith.constant 0 : i32
    %c0_i32_0 = arith.constant 0 : i32
    %c0_i32_1 = arith.constant 0 : i32
    return %c0_i32, %c0_i32_0 : i32, i32
  }
  func.func @transform_8(%arg0: i32) -> (i32, i32) {
    %c0_i32 = arith.constant 0 : i32
    %c0_i32_0 = arith.constant 0 : i32
    %c0_i32_1 = arith.constant 0 : i32
    return %c0_i32, %c0_i32_0 : i32, i32
  }
  func.func @transform_9(%arg0: i32) -> (i32, i32) {
    %c0_i32 = arith.constant 0 : i32
    %c0_i32_0 = arith.constant 0 : i32
    %c0_i32_1 = arith.constant 0 : i32
    return %c0_i32, %c0_i32_0 : i32, i32
  }
  func.func @transform_10(%arg0: i32) -> (i32, i32) {
    %c0_i32 = arith.constant 0 : i32
    %c0_i32_0 = arith.constant 0 : i32
    %c0_i32_1 = arith.constant 0 : i32
    return %c0_i32, %c0_i32_0 : i32, i32
  }
  func.func @transform_11(%arg0: i32) -> (i32, i32) {
    %c0_i32 = arith.constant 0 : i32
    %c0_i32_0 = arith.constant 0 : i32
    %c0_i32_1 = arith.constant 0 : i32
    return %c0_i32, %c0_i32_0 : i32, i32
  }
  func.func @transform_12(%arg0: i32) -> (i32, i32) {
    %c0_i32 = arith.constant 0 : i32
    %c0_i32_0 = arith.constant 0 : i32
    %c0_i32_1 = arith.constant 0 : i32
    return %c0_i32, %c0_i32_0 : i32, i32
  }
  func.func @transform_13(%arg0: i32) -> (i32, i32) {
    %c0_i32 = arith.constant 0 : i32
    %c0_i32_0 = arith.constant 0 : i32
    %c0_i32_1 = arith.constant 0 : i32
    return %c0_i32, %c0_i32_0 : i32, i32
  }
  func.func @transform_14(%arg0: i32) -> (i32, i32) {
    %c0_i32 = arith.constant 0 : i32
    %c0_i32_0 = arith.constant 0 : i32
    return %arg0, %c0_i32 : i32, i32
  }
}

</mosaic_0001>

<bundles_post_ra>
// kernel: _lambda_.1
= control target key start
LH: loop header
LB: loop body
LE: loop exit
PB: predicated region body
PF: predicated region fallthrough
CT: control target
= control target key end

     0   :  { %s4834_s0 = inlined_call_operand.vmem [shape: bf16[512,8], index: 0, kind: input, shape index: {}]   ;;  %s4835_s1 = inlined_call_operand.vmem [shape: bf16[512,128], index: 1, kind: input, shape index: {}]   ;;  %s4836_s2 = inlined_call_operand.vmem [shape: bf16[512,128], index: 2, kind: input, shape index: {}]   ;;  %s4837_s3 = inlined_call_operand.vmem [shape: bf16[8,256], index: 3, kind: input, shape index: {}]   ;;  %s4838_s4 = inlined_call_operand.vmem [shape: f32[1,256], index: 4, kind: input, shape index: {}]   ;;  %s4839_s5 = inlined_call_operand.vmem [shape: bf16[128,128], index: 5, kind: input, shape index: {}]   ;;  %s4840_s6 = inlined_call_operand.vmem [shape: f32[1,128], index: 6, kind: input, shape index: {}]   ;;  %s4841_s7 = inlined_call_operand.vmem [shape: bf16[128,128], index: 7, kind: input, shape index: {}]   ;;  %s4842_s8 = inlined_call_operand.vmem [shape: f32[1,128], index: 8, kind: input, shape index: {}]   ;;  %s4843_s9 = inlined_call_operand.vmem [shape: f32[8,128], index: 9, kind: input, shape index: {}]   ;;  %s4844_s10 = inlined_call_operand.vmem [shape: f32[1,128], index: 10, kind: input, shape index: {}]   ;;  %s4845_s11 = inlined_call_operand.vmem [shape: bf16[512,128], index: 11, kind: input, shape index: {}]   ;;  %s4846_s12 = inlined_call_operand.vmem [shape: f32[1,128], index: 12, kind: input, shape index: {}]   ;;  %s4847_s13 = inlined_call_operand.vmem [shape: f32[128,128], index: 13, kind: input, shape index: {}]   ;;  %s4848_s14 = inlined_call_operand.hbm [shape: f32[512,128], index: 14, kind: output, shape index: {}]  }
   0x1   :  { %4850 = sst [smem:[#allocation13_spill]] %s4834_s0 }
   0x2   :  { %4851 = sst [smem:[#allocation14_spill]] %s4837_s3 }
   0x3   :  { %4852 = sst [smem:[#allocation15_spill]] %s4843_s9 }
   0x4   :  { %19 = vsyncpa [#allocation3], 0 }
   0x5   :  { %21 = vsyncpa [#allocation3 + $0x1], 0  ;;  %s3725_s29 = smov 0   ;;  %s3727_s30 = smov 0  }
   0x6   :  { %s3729_s15 = smov 0   ;;  %s3731_s16 = smov 0  }
   0x7 LB: > { %4853 = sst [smem:[#allocation5_spill]] %s3641_s15  ;;  %s3746_s17 = sadd.s32 4294967295, %s3645_s16   ;;  %s3645_s16 = sphi %s3731_s16, %s4876_s16   ;;  %s3641_s15 = sphi %s3729_s15, %s4873_s15   ;;  %s3637_s30 = sphi %s3727_s30, %s4875_s30   ;;  %s3633_s29 = sphi %s3725_s29, %s4874_s29  }
   0x8   : > { %s3004_s18 = sadd.s32 4294967294, %s3645_s16   ;;  %s3750_s19 = sadd.s32 1, %s3645_s16  }
   0x9   : > { %s343_s20 = sadd.s32 1, %s3641_s15  ;;  %s340_s21 = ssub.s32 %s3645_s16, %s3750_s19 }
   0xa   : > { %p353_p0 = scmp.ne.s32.totalorder %s3641_s15, %s3637_s30  ;;  %p341_p1 = scmp.eq.s32.totalorder %s340_s21, 0 }
   0xb   : > { %p354_p2 = scmp.eq.s32.totalorder %s3746_s17, 1  ;;  %p359_p3 = scmp.ne.s32.totalorder %s3637_s30, %s3633_s29 }
   0xc   : > { %p360_p4 = scmp.eq.s32.totalorder %s3004_s18, 1  ;;  %p3007_p7 = scmp.ge.s32.totalorder %s3645_s16, 1 }
   0xd   : > { %s3761_s22 = scalar_select %p341_p1, %s3641_s15, %s343_s20  }
   0xe   : > { %p3763_p5 = por %p354_p2, %p353_p0  ;;  %p3767_p6 = por %p360_p4, %p359_p3 }
   0xf   : > { %4854 = sst [smem:[#allocation6_spill]] %s3761_s22  ;;  %p438_p8 = scmp.lt.s32.totalorder %s3645_s16, 3 }
  0x11   : > { %p439_p9 = pnand %p3007_p7, %p438_p8 }
  0x13   : > { %442 = sbr.rel (%p439_p9) target bundleno = 817 (0x331), region = 76 }
  0x18   : > { %v3476_v0 = vld [vmem:[%s4839_s5 + $0x38] sm:$0xff]  ;;  %s4857_s3 = sld [smem:[#allocation14_spill]]  ;;  %s3009_s21 = sshll.u32 %s3746_s17, 5  ;;  %vm687_vm0 = vcmask 1043456   ;;  %v3475_v7 = vld [vmem:[%s4839_s5 + $0x30] sm:$0xff]  ;;  %vm638_vm1 = vcmask 64512  }
  0x19   : > { %v3500_v1 = vld [vmem:[%s4841_s7 + $0x38] sm:$0xff]  ;;  %p495_p10 = scmp.lt.s32.totalorder %s3009_s21, 63  ;;  %1164 = vmatpush.bf16.msra.mxu2 %v3476_v0  ;;  %v3499_v8 = vld [vmem:[%s4841_s7 + $0x30] sm:$0xff]  ;;  %s4858_s9 = sld [smem:[#allocation15_spill]]  ;;  %v3474_v13 = vld [vmem:[%s4839_s5 + $0x28] sm:$0xff] }
  0x1a   : > { %1513 = vmatpush.bf16.msra.mxu3 %v3500_v1  ;;  %s4859_s0 = sld [smem:[#allocation13_spill]]  ;;  %v3498_v14 = vld [vmem:[%s4841_s7 + $0x28] sm:$0xff]  ;;  %v3473_v15 = vld [vmem:[%s4839_s5 + $0x20] sm:$0xff]  ;;  %v3472_v17 = vld [vmem:[%s4839_s5 + $0x18] sm:$0xff]  ;;  %s491_s27 = sand.u32 1, %s3637_s30  }
  0x1b   : > { %s4878_s21 = smov (!%p495_p10, %s3009_s21), 63  ;;  %v3497_v16 = vld [vmem:[%s4841_s7 + $0x20] sm:$0xff]  ;;  %v3496_v18 = vld [vmem:[%s4841_s7 + $0x18] sm:$0xff]  ;;  %v3471_v19 = vld [vmem:[%s4839_s5 + $0x10] sm:$0xff] }
  0x1c   : > { %s3789_s28 = sshll.u32 %s4878_s21, 2  ;;  %v3495_v20 = vld [vmem:[%s4841_s7 + $0x10] sm:$0xff]  ;;  %v3470_v22 = vld [vmem:[%s4839_s5 + $0x8] sm:$0xff]  ;;  %v3469_v24 = vld [vmem:[%s4839_s5] sm:$0xff] }
  0x1d   : > { %1165 = vmatpush.bf16.msra.mxu2 %v3475_v7  ;;  %v3494_v23 = vld [vmem:[%s4841_s7 + $0x8] sm:$0xff]  ;;  %v3493_v25 = vld [vmem:[%s4841_s7] sm:$0xff]  ;;  %s3846_s21 = scalar_lea.vmem %s4835_s1, %s3789_s28  ;;  %v3508_v41 = vld [vmem:[%s4845_s11 + $0x38] sm:$0xff] }
  0x1e   : > { %v546_v2 = vld [vmem:[%s4857_s3] sm:$0xff]  ;;  %1514 = vmatpush.bf16.msra.mxu3 %v3499_v8  ;;  %v3454_v29 = vld [vmem:[%s3846_s21 + $0x8] sm:$0xff]  ;;  %v3455_v32 = vld [vmem:[%s3846_s21 + $0x10] sm:$0xff] }
  0x1f   : > { %v634_v3 = vunpack.c.l.b16 %v546_v2  ;;  %v635_v4 = vunpack.c.h.b16 %v546_v2  ;;  %v2191_v11 = vld [vmem:[%s4858_s9] sm:$0xff]  ;;  %s3852_s9 = scalar_lea.vmem %s4836_s2, %s3789_s28  ;;  %v3456_v35 = vld [vmem:[%s3846_s21 + $0x18] sm:$0xff]  ;;  %v3458_v44 = vld [vmem:[%s3846_s21 + $0x28] sm:$0xff] }
  0x20   : > { %s3798_s26 = scalar_lea.vmem %s4859_s0, %s3789_s28  ;;  %v3453_v26 = vld [vmem:[%s3846_s21] sm:$0xff]  ;;  %v3478_v30 = vld [vmem:[%s3852_s9 + $0x8] sm:$0xff]  ;;  %v3479_v33 = vld [vmem:[%s3852_s9 + $0x10] sm:$0xff]  ;;  %s3008_s28 = sshll.u32 %s491_s27, 8 }
  0x21   : > { %v636_v5 = vpack.c.b16 %v634_v3, %v634_v3  ;;  %v637_v6 = vpack.c.b16 %v635_v4, %v635_v4  ;;  %v3437_v12 = vld [vmem:[%s3798_s26] sm:$0xff]  ;;  %1166 = vmatpush.bf16.msra.mxu2 %v3474_v13  ;;  %v3438_v21 = vld [vmem:[%s3798_s26 + $0x8] sm:$0xff]  ;;  %v3439_v28 = vld [vmem:[%s3798_s26 + $0x10] sm:$0xff] }
  0x22   : > { %1515 = vmatpush.bf16.msra.mxu3 %v3498_v14  ;;  %v3477_v27 = vld [vmem:[%s3852_s9] sm:$0xff]  ;;  %v3440_v31 = vld [vmem:[%s3798_s26 + $0x18] sm:$0xff]  ;;  %v3442_v37 = vld [vmem:[%s3798_s26 + $0x28] sm:$0xff] }
  0x23   : > { %v689_v9 = vsel %vm687_vm0, %v636_v5, 0  ;;  %v692_v10 = vsel %vm687_vm0, %v637_v6, 0  ;;  %v3441_v34 = vld [vmem:[%s3798_s26 + $0x20] sm:$0xff]  ;;  %v3480_v36 = vld [vmem:[%s3852_s9 + $0x18] sm:$0xff]  ;;  %v3443_v40 = vld [vmem:[%s3798_s26 + $0x30] sm:$0xff] }
  0x24   : > { %701 = vmatpush.bf16.msra.mxu0 %v689_v9  ;;  %790 = vmatpush.bf16.msra.mxu1 %v692_v10  ;;  %v3457_v38 = vld [vmem:[%s3846_s21 + $0x20] sm:$0xff]  ;;  %v3516_v42 = vld [vmem:[%s4845_s11 + $0x78] sm:$0xff]  ;;  %v3482_v45 = vld [vmem:[%s3852_s9 + $0x28] sm:$0xff] }
  0x25   : > { %1167 = vmatpush.bf16.msra.mxu2 %v3473_v15  ;;  %v3481_v39 = vld [vmem:[%s3852_s9 + $0x20] sm:$0xff]  ;;  %v2232_v43 = vld [vmem:[%s4847_s13 + $0x78] sm:$0xff]  ;;  %v2231_v47 = vld [vmem:[%s4847_s13 + $0x70] sm:$0xff] }
  0x26   : > { %1516 = vmatpush.bf16.msra.mxu3 %v3497_v16  ;;  %v3444_v46 = vld [vmem:[%s3798_s26 + $0x38] sm:$0xff]  ;;  %v3459_v48 = vld [vmem:[%s3846_s21 + $0x30] sm:$0xff]  ;;  %v547_v50 = vld [vmem:[%s4838_s4] sm:$0x3] }
  0x27   : > { %3079 = vmatmul.msk.bf16.vlgmr.msra.gmra.mxu0 %vm638_vm1, %v3437_v12  ;;  %3095 = vmatmul.msk.bf16.vlgmr.msra.gmra.mxu1 %vm638_vm1, %v3437_v12  ;;  %v3483_v49 = vld [vmem:[%s3852_s9 + $0x30] sm:$0xff]  ;;  %v3901_v51 = vperm.slane %v547_v50, 0  ;;  %v3903_v52 = vperm.slane %v547_v50, 1  ;;  %v3445_v53 = vld [vmem:[%s3798_s26 + $0x40] sm:$0xff]  ;;  %v2230_v63 = vld [vmem:[%s4847_s13 + $0x68] sm:$0xff] }
  0x28   : > { %2211 = vmatpush.msrb.mxu0 %v2191_v11  ;;  %2233 = vmatpush.msrb.mxu1 %v2232_v43  ;;  %v3507_v61 = vld [vmem:[%s4845_s11 + $0x30] sm:$0xff]  ;;  %v3460_v2 = vld [vmem:[%s3846_s21 + $0x38] sm:$0xff]  ;;  %v3446_v13 = vld [vmem:[%s3798_s26 + $0x48] sm:$0xff] }
  0x29   : > { %1168 = vmatpush.bf16.msra.mxu2 %v3472_v17  ;;  %v3515_v62 = vld [vmem:[%s4845_s11 + $0x70] sm:$0xff]  ;;  %v3484_v3 = vld [vmem:[%s3852_s9 + $0x38] sm:$0xff] }
  0x2a   : > { %1517 = vmatpush.bf16.msra.mxu3 %v3496_v18  ;;  %2234 = vmatpush.msrb.mxu1 %v2231_v47 }
  0x2c   : > { %2235 = vmatpush.msrb.mxu1 %v2230_v63 }
  0x2d   : > { %1169 = vmatpush.bf16.msra.mxu2 %v3471_v19 }
  0x2e   : > { %1518 = vmatpush.bf16.msra.mxu3 %v3495_v20 }
  0x31   : > { %1170 = vmatpush.bf16.msra.mxu2 %v3470_v22  ;;  %v514_v22 = vld [vmem:[%s3798_s26] sm:$0xff]  }
  0x32   : > { %1519 = vmatpush.bf16.msra.mxu3 %v3494_v23 }
  0x35   : > { %1171 = vmatpush.bf16.msra.mxu2 %v3469_v24  ;;  %v2082_v24 = vunpack.c.l.bf16 %v514_v22 }
  0x36   : > { %1520 = vmatpush.bf16.msra.mxu3 %v3493_v25  ;;  %v2083_v25 = vunpack.c.h.bf16 %v514_v22 }
  0x37   : > { %3080 = vmatmul.msk.bf16.gmra.mxu0 %vm638_vm1, %v3438_v21  ;;  %3096 = vmatmul.msk.bf16.gmra.mxu1 %vm638_vm1, %v3438_v21 }
  0x38   : > { %1172 = vmatmul.bf16.vlgmr.msra.gmra.mxu2 %v3453_v26  ;;  %v516_v26 = vld [vmem:[%s3798_s26 + $0x8] sm:$0xff]  }
  0x39   : > { %1521 = vmatmul.bf16.vlgmr.msra.gmra.mxu3 %v3477_v27  ;;  %2446 = vmatpush.bf16.msrb.mxu2 %v3508_v41  ;;  %v2229_v27 = vld [vmem:[%s4847_s13 + $0x60] sm:$0xff] }
  0x3a   : > { %2535 = vmatpush.bf16.msrb.mxu3 %v3516_v42  ;;  %2236 = vmatpush.msrb.mxu1 %v2229_v27 }
  0x3d   : > { %2447 = vmatpush.bf16.msrb.mxu2 %v3507_v61 }
  0x3e   : > { %2536 = vmatpush.bf16.msrb.mxu3 %v3515_v62 }
  0x47   : > { %3081 = vmatmul.msk.bf16.gmra.mxu0 %vm638_vm1, %v3439_v28  ;;  %3097 = vmatmul.msk.bf16.gmra.mxu1 %vm638_vm1, %v3439_v28  ;;  %v2084_v28 = vunpack.c.l.bf16 %v516_v26 }
  0x48   : > { %1177 = vmatmul.bf16.gmra.mxu2 %v3454_v29  ;;  %v2114_v29 = vsel %vm638_vm1, %v2082_v24, 0.0  ;;  %v3514_v24 = vld [vmem:[%s4845_s11 + $0x68] sm:$0xff] }
  0x49   : > { %1526 = vmatmul.bf16.gmra.mxu3 %v3478_v30 }
  0x4a   : > { %2537 = vmatpush.bf16.msrb.mxu3 %v3514_v24 }
  0x57   : > { %3082 = vmatmul.msk.bf16.gmra.mxu0 %vm638_vm1, %v3440_v31  ;;  %3098 = vmatmul.msk.bf16.gmra.mxu1 %vm638_vm1, %v3440_v31 }
  0x58   : > { %1182 = vmatmul.bf16.gmra.mxu2 %v3455_v32  ;;  %v3461_v32 = vld [vmem:[%s3846_s21 + $0x40] sm:$0xff] }
  0x59   : > { %1531 = vmatmul.bf16.gmra.mxu3 %v3479_v33  ;;  %v3485_v33 = vld [vmem:[%s3852_s9 + $0x40] sm:$0xff] }
  0x67   : > { %3083 = vmatmul.msk.bf16.gmra.mxu0 %vm638_vm1, %v3441_v34  ;;  %3099 = vmatmul.msk.bf16.gmra.mxu1 %vm638_vm1, %v3441_v34  ;;  %v2115_v34 = vsel %vm638_vm1, %v2083_v25, 0.0  ;;  %v2228_v25 = vld [vmem:[%s4847_s13 + $0x58] sm:$0xff] }
  0x68   : > { %1187 = vmatmul.bf16.gmra.mxu2 %v3456_v35  ;;  %2237 = vmatpush.msrb.mxu1 %v2228_v25 }
  0x69   : > { %1536 = vmatmul.bf16.gmra.mxu3 %v3480_v36 }
  0x77   : > { %3084 = vmatmul.msk.bf16.gmra.mxu0 %vm638_vm1, %v3442_v37  ;;  %3100 = vmatmul.msk.bf16.gmra.mxu1 %vm638_vm1, %v3442_v37  ;;  %v2085_v37 = vunpack.c.h.bf16 %v516_v26 }
  0x78   : > { %1192 = vmatmul.bf16.gmra.mxu2 %v3457_v38  ;;  %v2116_v38 = vadd.f32 %v2115_v34, %v2114_v29 }
  0x79   : > { %1541 = vmatmul.bf16.gmra.mxu3 %v3481_v39  ;;  %v518_v39 = vld [vmem:[%s3798_s26 + $0x10] sm:$0xff]  }
  0x7a   : > { %v2086_v43 = vunpack.c.l.bf16 %v518_v39 }
  0x7c   : > { %v2121_v50 = vsel %vm638_vm1, %v2086_v43, 0.0  ;;  %v526_v43 = vld [vmem:[%s3798_s26 + $0x30] sm:$0xff]  }
  0x87   : > { %3085 = vmatmul.msk.bf16.gmra.mxu0 %vm638_vm1, %v3443_v40  ;;  %3101 = vmatmul.msk.bf16.gmra.mxu1 %vm638_vm1, %v3443_v40  ;;  %v2117_v40 = vsel %vm638_vm1, %v2084_v28, 0.0  ;;  %v524_v28 = vld [vmem:[%s3798_s26 + $0x28] sm:$0xff]  }
  0x88   : > { %1197 = vmatmul.bf16.gmra.mxu2 %v3458_v44  ;;  %v2118_v44 = vadd.f32 %v2117_v40, %v2116_v38  ;;  %v2093_v40 = vunpack.c.h.bf16 %v524_v28 }
  0x89   : > { %1546 = vmatmul.bf16.gmra.mxu3 %v3482_v45  ;;  %v3948_v45 = vld [vmem:[%s4842_s8] ss:$0 sm:$0xff] }
  0x97   : > { %3086 = vmatmul.msk.bf16.gmra.mxu0 %vm638_vm1, %v3444_v46  ;;  %3102 = vmatmul.msk.bf16.gmra.mxu1 %vm638_vm1, %v3444_v46  ;;  %v2119_v46 = vsel %vm638_vm1, %v2085_v37, 0.0  ;;  %v2092_v37 = vunpack.c.l.bf16 %v524_v28 }
  0x98   : > { %1202 = vmatmul.bf16.gmra.mxu2 %v3459_v48  ;;  %v2087_v48 = vunpack.c.h.bf16 %v518_v39 }
  0x99   : > { %1551 = vmatmul.bf16.gmra.mxu3 %v3483_v49  ;;  %v2120_v49 = vadd.f32 %v2119_v46, %v2118_v44  ;;  %v2133_v44 = vsel %vm638_vm1, %v2092_v37, 0.0 }
  0xa4   : > { %v703_v54 = vpop.f32.mrf.mxu0  ;;  %v792_v55 = vpop.f32.mrf.mxu1 }
  0xa5   : > { %v704_v56 = vadd.f32 %v703_v54, %v3901_v51  ;;  %v793_v57 = vadd.f32 %v792_v55, %v3903_v52 }
  0xa7   : > { %v872_v58 = vmax.f32 %v704_v56, 0.0  ;;  %v873_v59 = vmax.f32 %v793_v57, 0.0  ;;  %3087 = vmatmul.msk.bf16.gmra.mxu0 %vm638_vm1, %v3445_v53  ;;  %3103 = vmatmul.msk.bf16.gmra.mxu1 %vm638_vm1, %v3445_v53  ;;  %v520_v53 = vld [vmem:[%s3798_s26 + $0x18] sm:$0xff]   ;;  %v3447_v56 = vld [vmem:[%s3798_s26 + $0x50] sm:$0xff] }
  0xa8   : > { %1207 = vmatmul.bf16.gmra.mxu2 %v3460_v2  ;;  %v2088_v57 = vunpack.c.l.bf16 %v520_v53 }
  0xa9   : > { %v936_v60 = vpack.c.bf16 %v873_v59, %v872_v58  ;;  %1556 = vmatmul.bf16.gmra.mxu3 %v3484_v3  ;;  %v2122_v58 = vadd.f32 %v2121_v50, %v2120_v49  ;;  %v2123_v59 = vsel %vm638_vm1, %v2087_v48, 0.0  ;;  %v2094_v48 = vunpack.c.l.bf16 %v526_v43 }
  0xab   : > { %v1698_v9 = vunpack.c.l.b16 %v936_v60  ;;  %v1699_v10 = vunpack.c.h.b16 %v936_v60 }
  0xac   : > { %v705_v0 = vpop.f32.mrf.mxu0  ;;  %v794_v1 = vpop.f32.mrf.mxu1 }
  0xad   : > { %v706_v4 = vadd.f32 %v705_v0, %v3901_v51  ;;  %v795_v5 = vadd.f32 %v794_v1, %v3903_v52 }
  0xaf   : > { %v874_v6 = vmax.f32 %v706_v4, 0.0  ;;  %v875_v7 = vmax.f32 %v795_v5, 0.0  ;;  %v2089_v4 = vunpack.c.h.bf16 %v520_v53  ;;  %v2124_v5 = vadd.f32 %v2123_v59, %v2122_v58 }
  0xb0   : > { %v2137_v59 = vsel %vm638_vm1, %v2094_v48, 0.0 }
  0xb1   : > { %v937_v8 = vpack.c.bf16 %v875_v7, %v874_v6  ;;  %v522_v7 = vld [vmem:[%s3798_s26 + $0x20] sm:$0xff]  }
  0xb3   : > { %v1700_v11 = vunpack.c.l.b16 %v937_v8  ;;  %v1701_v12 = vunpack.c.h.b16 %v937_v8  ;;  %v2125_v8 = vsel %vm638_vm1, %v2088_v57, 0.0  ;;  %v2095_v57 = vunpack.c.h.bf16 %v526_v43 }
  0xb4   : > { %v708_v14 = vpop.f32.mrf.mxu0  ;;  %v797_v15 = vpop.f32.mrf.mxu1 }
  0xb5   : > { %v709_v16 = vadd.f32 %v708_v14, %v3901_v51  ;;  %v798_v17 = vadd.f32 %v797_v15, %v3903_v52  ;;  %v3926_v18 = vpack.c.b16 %v1700_v11, %v1698_v9  ;;  %v3928_v19 = vpack.c.b16 %v1701_v12, %v1699_v10 }
  0xb6   : > { %v2090_v12 = vunpack.c.l.bf16 %v522_v7  ;;  %v2127_v15 = vsel %vm638_vm1, %v2089_v4, 0.0 }
  0xb7   : > { %v876_v20 = vmax.f32 %v709_v16, 0.0  ;;  %v877_v21 = vmax.f32 %v798_v17, 0.0  ;;  %3088 = vmatmul.msk.bf16.gmra.mxu0 %vm638_vm1, %v3446_v13  ;;  %3104 = vmatmul.msk.bf16.gmra.mxu1 %vm638_vm1, %v3446_v13  ;;  %v2126_v13 = vadd.f32 %v2125_v8, %v2124_v5 }
  0xb8   : > { %1212 = vmatmul.bf16.gmra.mxu2 %v3461_v32  ;;  %v2129_v22 = vsel %vm638_vm1, %v2090_v12, 0.0 }
  0xb9   : > { %v938_v23 = vpack.c.bf16 %v877_v21, %v876_v20  ;;  %1561 = vmatmul.bf16.gmra.mxu3 %v3485_v33  ;;  %v2091_v20 = vunpack.c.h.bf16 %v522_v7  ;;  %v2128_v21 = vadd.f32 %v2127_v15, %v2126_v13 }
  0xbb   : > { %v3953_v54 = vpop.f32.mrf.mxu2  ;;  %v1702_v61 = vunpack.c.l.b16 %v938_v23  ;;  %v1703_v6 = vunpack.c.h.b16 %v938_v23  ;;  %v3506_v23 = vld [vmem:[%s4845_s11 + $0x28] sm:$0xff]  ;;  %v2130_v29 = vadd.f32 %v2129_v22, %v2128_v21 }
  0xbc   : > { %v710_v30 = vpop.f32.mrf.mxu0  ;;  %v799_v31 = vpop.f32.mrf.mxu1  ;;  %2448 = vmatpush.bf16.msrb.mxu2 %v3506_v23 }
  0xbd   : > { %v711_v35 = vadd.f32 %v710_v30, %v3901_v51  ;;  %v800_v36 = vadd.f32 %v799_v31, %v3903_v52  ;;  %v1522_v55 = vpop.f32.mrf.mxu3  ;;  %v2131_v30 = vsel %vm638_vm1, %v2091_v20, 0.0 }
  0xbe   : > { %v1523_v62 = vadd.f32 %v3948_v45, %v1522_v55  ;;  %v2135_v55 = vsel %vm638_vm1, %v2093_v40, 0.0 }
  0xbf   : > { %v878_v41 = vmax.f32 %v711_v35, 0.0  ;;  %v879_v42 = vmax.f32 %v800_v36, 0.0  ;;  %v3462_v35 = vld [vmem:[%s3846_s21 + $0x48] sm:$0xff] }
  0xc0   : > { %v1602_v14 = vmax.f32 %v1523_v62, 0.0  ;;  %v3486_v36 = vld [vmem:[%s3852_s9 + $0x48] sm:$0xff] }
  0xc1   : > { %v939_v47 = vpack.c.bf16 %v879_v42, %v878_v41  ;;  %v2132_v41 = vadd.f32 %v2131_v30, %v2130_v29 }
  0xc2   : > { %v1634_v31 = vpack.c.bf16 %v1602_v14, %v1602_v14  ;;  %v530_v14 = vld [vmem:[%s3798_s26 + $0x40] sm:$0xff]  }
  0xc3   : > { %v1704_v60 = vunpack.c.l.b16 %v939_v47  ;;  %v1705_v1 = vunpack.c.h.b16 %v939_v47  ;;  %v3981_v26 = vpop.f32.mrf.mxu2  ;;  %v2134_v49 = vadd.f32 %v2133_v44, %v2132_v41  ;;  %v2098_v23 = vunpack.c.l.bf16 %v530_v14  ;;  %v3463_v41 = vld [vmem:[%s3846_s21 + $0x50] sm:$0xff] }
  0xc4   : > { %v713_v63 = vpop.f32.mrf.mxu0  ;;  %v802_v0 = vpop.f32.mrf.mxu1  ;;  %v1954_v50 = vunpack.c.l.b16 %v1634_v31  ;;  %v2099_v30 = vunpack.c.h.bf16 %v530_v14 }
  0xc5   : > { %v714_v2 = vadd.f32 %v713_v63, %v3901_v51  ;;  %v803_v3 = vadd.f32 %v802_v0, %v3903_v52  ;;  %v3962_v9 = vpack.c.b16 %v1704_v60, %v1702_v61  ;;  %v3967_v16 = vpack.c.b16 %v1705_v1, %v1703_v6  ;;  %v1524_v27 = vpop.f32.mrf.mxu3  ;;  %v528_v61 = vld [vmem:[%s3798_s26 + $0x38] sm:$0xff]  }
  0xc6   : > { %v1525_v32 = vadd.f32 %v3948_v45, %v1524_v27  ;;  %v2136_v58 = vadd.f32 %v2135_v55, %v2134_v49  ;;  %v3448_v0 = vld [vmem:[%s3798_s26 + $0x58] sm:$0xff]  ;;  %v2096_v1 = vunpack.c.l.bf16 %v528_v61  ;;  %v2097_v12 = vunpack.c.h.bf16 %v528_v61  ;;  %v534_v49 = vld [vmem:[%s3798_s26 + $0x50] sm:$0xff]  }
  0xc7   : > { %v880_v10 = vmax.f32 %v714_v2, 0.0  ;;  %v881_v11 = vmax.f32 %v803_v3, 0.0  ;;  %3089 = vmatmul.msk.bf16.gmra.mxu0 %vm638_vm1, %v3447_v56  ;;  %3105 = vmatmul.msk.bf16.gmra.mxu1 %vm638_vm1, %v3447_v56  ;;  %v2139_v3 = vsel %vm638_vm1, %v2095_v57, 0.0  ;;  %v2147_v43 = vsel %vm638_vm1, %v2099_v30, 0.0 }
  0xc8   : > { %v1603_v42 = vmax.f32 %v1525_v32, 0.0  ;;  %1217 = vmatmul.bf16.gmra.mxu2 %v3462_v35  ;;  %v2138_v2 = vadd.f32 %v2137_v59, %v2136_v58  ;;  %v2141_v15 = vsel %vm638_vm1, %v2096_v1, 0.0  ;;  %v2143_v27 = vsel %vm638_vm1, %v2097_v12, 0.0  ;;  %v536_v1 = vld [vmem:[%s3798_s26 + $0x58] sm:$0xff]  }
  0xc9   : > { %v3969_v17 = vpack.c.bf16 %v881_v11, %v880_v10  ;;  %1566 = vmatmul.bf16.gmra.mxu3 %v3486_v36  ;;  %v2145_v32 = vsel %vm638_vm1, %v2098_v23, 0.0  ;;  %v538_v23 = vld [vmem:[%s3798_s26 + $0x60] sm:$0xff]  }
  0xca   : > { %v1635_v53 = vpack.c.bf16 %v1603_v42, %v1603_v42  ;;  %v2140_v13 = vadd.f32 %v2139_v3, %v2138_v2  ;;  %v3487_v42 = vld [vmem:[%s3852_s9 + $0x50] sm:$0xff] }
  0xcb   : > { %v3995_v62 = vpop.f32.mrf.mxu2  ;;  %v1706_v5 = vunpack.c.l.b16 %v3969_v17  ;;  %v1707_v25 = vunpack.c.h.b16 %v3969_v17 }
  0xcc   : > { %v715_v33 = vpop.f32.mrf.mxu0  ;;  %v804_v34 = vpop.f32.mrf.mxu1  ;;  %v1955_v60 = vunpack.c.l.b16 %v1635_v53  ;;  %v2142_v24 = vadd.f32 %v2141_v15, %v2140_v13  ;;  %v2105_v15 = vunpack.c.h.bf16 %v536_v1 }
  0xcd   : > { %v716_v38 = vadd.f32 %v715_v33, %v3901_v51  ;;  %v805_v39 = vadd.f32 %v804_v34, %v3903_v52  ;;  %v3997_v63 = vpop.f32.mrf.mxu3  ;;  %v2227_v33 = vld [vmem:[%s4847_s13 + $0x50] sm:$0xff]  ;;  %v532_v34 = vld [vmem:[%s3798_s26 + $0x48] sm:$0xff]  }
  0xce   : > { %v4002_v6 = vpack.c.b16 %v1955_v60, %v1954_v50  ;;  %v2144_v31 = vadd.f32 %v2143_v27, %v2142_v24  ;;  %2238 = vmatpush.msrb.mxu1 %v2227_v33  ;;  %v2100_v37 = vunpack.c.l.bf16 %v532_v34  ;;  %v2103_v60 = vunpack.c.h.bf16 %v534_v49 }
  0xcf   : > { %v882_v46 = vmax.f32 %v716_v38, 0.0  ;;  %v883_v47 = vmax.f32 %v805_v39, 0.0  ;;  %v2106_v27 = vunpack.c.l.bf16 %v538_v23  ;;  %v2159_v30 = vsel %vm638_vm1, %v2105_v15, 0.0 }
  0xd0   : > { %4860 = vst [vmem:[#allocation7_spill] sm:$0xff] %v4002_v6  ;;  %v2146_v38 = vadd.f32 %v2145_v32, %v2144_v31  ;;  %v2149_v50 = vsel %vm638_vm1, %v2100_v37, 0.0  ;;  %v2107_v32 = vunpack.c.h.bf16 %v538_v23  ;;  %v3513_v37 = vld [vmem:[%s4845_s11 + $0x60] sm:$0xff] }
  0xd1   : > { %v941_v56 = vpack.c.bf16 %v883_v47, %v882_v46  ;;  %v2101_v47 = vunpack.c.h.bf16 %v532_v34  ;;  %v2161_v33 = vsel %vm638_vm1, %v2106_v27, 0.0  ;;  %v3505_v34 = vld [vmem:[%s4845_s11 + $0x20] sm:$0xff]  ;;  %2538 = vmatpush.bf16.msrb.mxu3 %v3513_v37 }
  0xd2   : > { %v2148_v48 = vadd.f32 %v2147_v43, %v2146_v38  ;;  %v2226_v38 = vld [vmem:[%s4847_s13 + $0x48] sm:$0xff]  ;;  %v2163_v43 = vsel %vm638_vm1, %v2107_v32, 0.0  ;;  %2449 = vmatpush.bf16.msrb.mxu2 %v3505_v34  ;;  %v2225_v23 = vld [vmem:[%s4847_s13 + $0x40] sm:$0xff] }
  0xd3   : > { %v1708_v4 = vunpack.c.l.b16 %v941_v56  ;;  %v1709_v28 = vunpack.c.h.b16 %v941_v56  ;;  %v4021_v36 = vpop.f32.mrf.mxu2  ;;  %v2102_v56 = vunpack.c.l.bf16 %v534_v49  ;;  %v2151_v58 = vsel %vm638_vm1, %v2101_v47, 0.0  ;;  %2239 = vmatpush.msrb.mxu1 %v2226_v38  ;;  %v3464_v47 = vld [vmem:[%s3846_s21 + $0x58] sm:$0xff] }
  0xd4   : > { %v718_v7 = vpop.f32.mrf.mxu0  ;;  %v807_v8 = vpop.f32.mrf.mxu1  ;;  %v2150_v57 = vadd.f32 %v2149_v50, %v2148_v48  ;;  %v3488_v48 = vld [vmem:[%s3852_s9 + $0x58] sm:$0xff] }
  0xd5   : > { %v719_v10 = vadd.f32 %v718_v7, %v3901_v51  ;;  %v808_v11 = vadd.f32 %v807_v8, %v3903_v52  ;;  %v4008_v20 = vpack.c.b16 %v1708_v4, %v1706_v5  ;;  %v4019_v35 = vpack.c.b16 %v1709_v28, %v1707_v25  ;;  %v4023_v17 = vpop.f32.mrf.mxu3  ;;  %v3449_v4 = vld [vmem:[%s3798_s26 + $0x60] sm:$0xff]  ;;  %2240 = vmatpush.msrb.mxu1 %v2225_v23 }
  0xd6   : > { %v2152_v61 = vadd.f32 %v2151_v58, %v2150_v57  ;;  %v2104_v5 = vunpack.c.l.bf16 %v536_v1  ;;  %v2155_v8 = vsel %vm638_vm1, %v2103_v60, 0.0  ;;  %v542_v57 = vld [vmem:[%s3798_s26 + $0x70] sm:$0xff]   ;;  %v3647_v23 = vmov 256.0  }
  0xd7   : > { %v884_v21 = vmax.f32 %v719_v10, 0.0  ;;  %v885_v22 = vmax.f32 %v808_v11, 0.0  ;;  %3090 = vmatmul.msk.bf16.gmra.mxu0 %vm638_vm1, %v3448_v0  ;;  %3106 = vmatmul.msk.bf16.gmra.mxu1 %vm638_vm1, %v3448_v0  ;;  %v2153_v0 = vsel %vm638_vm1, %v2102_v56, 0.0  ;;  %v2110_v1 = vunpack.c.l.bf16 %v542_v57 }
  0xd8   : > { %1222 = vmatmul.bf16.gmra.mxu2 %v3463_v41  ;;  %v2154_v7 = vadd.f32 %v2153_v0, %v2152_v61  ;;  %v2157_v24 = vsel %vm638_vm1, %v2104_v5, 0.0  ;;  %v540_v41 = vld [vmem:[%s3798_s26 + $0x68] sm:$0xff]   ;;  %v3523_v0 = vld [vmem:[%s4845_s11 + $0xb0] sm:$0xff]  ;;  %3579 = vrcp.f32 %v3647_v23 }
  0xd9   : > { %v942_v29 = vpack.c.bf16 %v885_v22, %v884_v21  ;;  %1571 = vmatmul.bf16.gmra.mxu3 %v3487_v42  ;;  %v2108_v49 = vunpack.c.l.bf16 %v540_v41  ;;  %v3450_v61 = vld [vmem:[%s3798_s26 + $0x68] sm:$0xff] }
  0xda   : > { %v2156_v21 = vadd.f32 %v2155_v8, %v2154_v7 }
  0xdb   : > { %v4035_v2 = vpop.f32.mrf.mxu2  ;;  %v1710_v11 = vunpack.c.l.b16 %v942_v29  ;;  %v1711_v22 = vunpack.c.h.b16 %v942_v29  ;;  %v2165_v56 = vsel %vm638_vm1, %v2108_v49, 0.0 }
  0xdc   : > { %v720_v39 = vpop.f32.mrf.mxu0  ;;  %v809_v40 = vpop.f32.mrf.mxu1  ;;  %v2158_v28 = vadd.f32 %v2157_v24, %v2156_v21 }
  0xdd   : > { %v721_v44 = vadd.f32 %v720_v39, %v3901_v51  ;;  %v810_v46 = vadd.f32 %v809_v40, %v3903_v52  ;;  %v4037_v3 = vpop.f32.mrf.mxu3 }
  0xde   : > { %v2160_v29 = vadd.f32 %v2159_v30, %v2158_v28  ;;  %v3521_v30 = vld [vmem:[%s4845_s11 + $0xa0] sm:$0xff] }
  0xdf   : > { %v886_v53 = vmax.f32 %v721_v44, 0.0  ;;  %v887_v55 = vmax.f32 %v810_v46, 0.0 }
  0xe0   : > { %v2162_v42 = vadd.f32 %v2161_v33, %v2160_v29 }
  0xe1   : > { %v943_v59 = vpack.c.bf16 %v887_v55, %v886_v53  ;;  %v3524_v53 = vld [vmem:[%s4845_s11 + $0xb8] sm:$0xff]  ;;  %v2109_v55 = vunpack.c.h.bf16 %v540_v41  ;;  %v3465_v41 = vld [vmem:[%s3846_s21 + $0x60] sm:$0xff] }
  0xe2   : > { %v2164_v50 = vadd.f32 %v2163_v43, %v2162_v42  ;;  %2624 = vmatpush.bf16.msra.mxu0 %v3524_v53  ;;  %v3489_v42 = vld [vmem:[%s3852_s9 + $0x60] sm:$0xff]  ;;  %v3520_v53 = vld [vmem:[%s4845_s11 + $0x98] sm:$0xff] }
  0xe3   : > { %v1712_v10 = vunpack.c.l.b16 %v943_v59  ;;  %v1713_v14 = vunpack.c.h.b16 %v943_v59  ;;  %v4064_v39 = vpop.f32.mrf.mxu2 }
  0xe4   : > { %v4041_v12 = vpop.f32.mrf.mxu0  ;;  %v4043_v13 = vpop.f32.mrf.mxu1  ;;  %v2166_v58 = vadd.f32 %v2165_v56, %v2164_v50 }
  0xe5   : > { %v4047_v25 = vpack.c.b16 %v1712_v10, %v1710_v11  ;;  %v4052_v31 = vpack.c.b16 %v1713_v14, %v1711_v22  ;;  %v4066_v40 = vpop.f32.mrf.mxu3  ;;  %v3522_v10 = vld [vmem:[%s4845_s11 + $0xa8] sm:$0xff]  ;;  %v2111_v11 = vunpack.c.h.bf16 %v542_v57  ;;  %v2169_v14 = vsel %vm638_vm1, %v2110_v1, 0.0  ;;  %v544_v22 = vld [vmem:[%s3798_s26 + $0x78] sm:$0xff]  }
  0xe6   : > { %2625 = vmatpush.bf16.msra.mxu0 %v3523_v0  ;;  %v2112_v32 = vunpack.c.l.bf16 %v544_v22 }
  0xe7   : > { %3091 = vmatmul.msk.bf16.gmra.mxu0 %vm638_vm1, %v3449_v4  ;;  %3107 = vmatmul.msk.bf16.gmra.mxu1 %vm638_vm1, %v3449_v4  ;;  %4861 = vst [vmem:[#allocation8_spill] sm:$0xff] %v4052_v31  ;;  %v2167_v4 = vsel %vm638_vm1, %v2109_v55, 0.0  ;;  %v2171_v29 = vsel %vm638_vm1, %v2111_v11, 0.0  ;;  %v2113_v55 = vunpack.c.h.bf16 %v544_v22 }
  0xe8   : > { %1227 = vmatmul.bf16.gmra.mxu2 %v3464_v47  ;;  %v2168_v8 = vadd.f32 %v2167_v4, %v2166_v58  ;;  %v2173_v56 = vsel %vm638_vm1, %v2112_v32, 0.0 }
  0xe9   : > { %1576 = vmatmul.bf16.gmra.mxu3 %v3488_v48 }
  0xea   : > { %2626 = vmatpush.bf16.msra.mxu0 %v3522_v10  ;;  %v2170_v24 = vadd.f32 %v2169_v14, %v2168_v8  ;;  %v3519_v8 = vld [vmem:[%s4845_s11 + $0x90] sm:$0xff]  ;;  %v2175_v10 = vsel %vm638_vm1, %v2113_v55, 0.0 }
  0xeb   : > { %v4081_v59 = vpop.f32.mrf.mxu2 }
  0xec   : > { %v4070_v44 = vpop.f32.mrf.mxu0  ;;  %v4072_v46 = vpop.f32.mrf.mxu1  ;;  %v2172_v48 = vadd.f32 %v2171_v29, %v2170_v24 }
  0xed   : > { %v4083_v60 = vpop.f32.mrf.mxu3 }
  0xee   : > { %2627 = vmatpush.bf16.msra.mxu0 %v3521_v30 }
  0xf2   : > { %2628 = vmatpush.bf16.msra.mxu0 %v3520_v53 }
  0xf3   : > { %v4102_v27 = vpop.f32.mrf.mxu2 }
  0xf4   : > { %v728_v5 = vpop.f32.mrf.mxu0  ;;  %v817_v7 = vpop.f32.mrf.mxu1 }
  0xf5   : > { %v729_v15 = vadd.f32 %v728_v5, %v3901_v51  ;;  %v818_v21 = vadd.f32 %v817_v7, %v3903_v52  ;;  %v4104_v28 = vpop.f32.mrf.mxu3  ;;  %v3451_v7 = vld [vmem:[%s3798_s26 + $0x70] sm:$0xff] }
  0xf6   : > { %2629 = vmatpush.bf16.msra.mxu0 %v3519_v8 }
  0xf7   : > { %3092 = vmatmul.msk.bf16.gmra.mxu0 %vm638_vm1, %v3450_v61  ;;  %3108 = vmatmul.msk.bf16.gmra.mxu1 %vm638_vm1, %v3450_v61  ;;  %v892_v33 = vmax.f32 %v729_v15, 0.0  ;;  %v893_v34 = vmax.f32 %v818_v21, 0.0  ;;  %v2174_v61 = vadd.f32 %v2173_v56, %v2172_v48  ;;  %v3466_v56 = vld [vmem:[%s3846_s21 + $0x68] sm:$0xff] }
  0xf8   : > { %1232 = vmatmul.bf16.gmra.mxu2 %v3465_v41  ;;  %v2224_v41 = vld [vmem:[%s4847_s13 + $0x38] sm:$0xff] }
  0xf9   : > { %v946_v57 = vpack.c.bf16 %v893_v34, %v892_v33  ;;  %1581 = vmatmul.bf16.gmra.mxu3 %v3489_v42  ;;  %v2176_v22 = vadd.f32 %v2175_v10, %v2174_v61  ;;  %v3518_v33 = vld [vmem:[%s4845_s11 + $0x88] sm:$0xff]  ;;  %v3504_v34 = vld [vmem:[%s4845_s11 + $0x18] sm:$0xff]  ;;  %2241 = vmatpush.msrb.mxu1 %v2224_v41 }
  0xfa   : > { %2630 = vmatpush.bf16.msra.mxu0 %v3518_v33  ;;  %2450 = vmatpush.bf16.msrb.mxu2 %v3504_v34  ;;  %v3511_v34 = vld [vmem:[%s4845_s11 + $0x50] sm:$0xff] }
  0xfb   : > { %v4118_v4 = vpop.f32.mrf.mxu2  ;;  %v1718_v15 = vunpack.c.l.b16 %v946_v57  ;;  %v1719_v21 = vunpack.c.h.b16 %v946_v57  ;;  %v3490_v57 = vld [vmem:[%s3852_s9 + $0x68] sm:$0xff] }
  0xfc   : > { %v730_v37 = vpop.f32.mrf.mxu0  ;;  %v819_v38 = vpop.f32.mrf.mxu1 }
  0xfd   : > { %v731_v43 = vadd.f32 %v730_v37, %v3901_v51  ;;  %v820_v47 = vadd.f32 %v819_v38, %v3903_v52  ;;  %v4120_v5 = vpop.f32.mrf.mxu3  ;;  %v2177_v37 = vrot.slane %v2176_v22, 4  ;;  %v3512_v38 = vld [vmem:[%s4845_s11 + $0x58] sm:$0xff] }
  0xfe   : > { %2539 = vmatpush.bf16.msrb.mxu3 %v3512_v38 }
  0xff   : > { %v894_v49 = vmax.f32 %v731_v43, 0.0  ;;  %v895_v50 = vmax.f32 %v820_v47, 0.0 }
 0x101   : > { %v947_v58 = vpack.c.bf16 %v895_v50, %v894_v49  ;;  %v3517_v49 = vld [vmem:[%s4845_s11 + $0x80] sm:$0xff]  ;;  %v4154_v50 = vpop.eup %3579 }
 0x102   : > { %2631 = vmatpush.bf16.msra.mxu0 %v3517_v49  ;;  %v2184_v10 = vmul.f32 256.0, %v4154_v50  ;;  %2540 = vmatpush.bf16.msrb.mxu3 %v3511_v34  ;;  %v4177_v49 = vld [vmem:[%s4840_s6] ss:$0 sm:$0xff]  ;;  %vm2188_vm2 = vweird.f32 %v4154_v50 }
 0x103   : > { %v1720_v0 = vunpack.c.l.b16 %v947_v58  ;;  %v1721_v1 = vunpack.c.h.b16 %v947_v58  ;;  %v4147_v47 = vpop.f32.mrf.mxu2 }
 0x104   : > { %v733_v11 = vpop.f32.mrf.mxu0  ;;  %v822_v14 = vpop.f32.mrf.mxu1  ;;  %v2185_v33 = vsub.f32 1.0, %v2184_v10  ;;  %v1176_v10 = vadd.f32 %v4177_v49, %v3981_v26  ;;  %v3509_v26 = vld [vmem:[%s4845_s11 + $0x40] sm:$0xff] }
 0x105   : > { %v4127_v24 = vpack.c.b16 %v1720_v0, %v1718_v15  ;;  %v4129_v30 = vpack.c.b16 %v1721_v1, %v1719_v21  ;;  %v734_v32 = vadd.f32 %v733_v11, %v3901_v51  ;;  %v823_v29 = vadd.f32 %v822_v14, %v3903_v52  ;;  %v4149_v48 = vpop.f32.mrf.mxu3 }
 0x106   : > { %v2178_v0 = vadd.f32 %v2177_v37, %v2176_v22  ;;  %v3503_v22 = vld [vmem:[%s4845_s11 + $0x10] sm:$0xff] }
 0x107   : > { %4862 = vst [vmem:[#allocation9_spill] sm:$0xff] %v4127_v24  ;;  %3093 = vmatmul.msk.bf16.gmra.mxu0 %vm638_vm1, %v3451_v7  ;;  %3109 = vmatmul.msk.bf16.gmra.mxu1 %vm638_vm1, %v3451_v7  ;;  %v896_v42 = vmax.f32 %v734_v32, 0.0  ;;  %v897_v43 = vmax.f32 %v823_v29, 0.0  ;;  %v3452_v29 = vld [vmem:[%s3798_s26 + $0x78] sm:$0xff] }
 0x108   : > { %4863 = vst [vmem:[#allocation10_spill] sm:$0xff] %v4129_v30  ;;  %1237 = vmatmul.bf16.gmra.mxu2 %v3466_v56  ;;  %v2179_v14 = vrot.slane %v2178_v0, 2 }
 0x109   : > { %v948_v1 = vpack.c.bf16 %v897_v43, %v896_v42  ;;  %1586 = vmatmul.bf16.gmra.mxu3 %v3490_v57  ;;  %2451 = vmatpush.bf16.msrb.mxu2 %v3503_v22 }
 0x10b   : > { %v4161_v23 = vpop.f32.mrf.mxu2  ;;  %v1722_v37 = vunpack.c.l.b16 %v948_v1  ;;  %v1723_v42 = vunpack.c.h.b16 %v948_v1  ;;  %v1528_v1 = vadd.f32 %v3948_v45, %v3997_v63 }
 0x10c   : > { %v735_v53 = vpop.f32.mrf.mxu0  ;;  %v824_v55 = vpop.f32.mrf.mxu1 }
 0x10d   : > { %v736_v58 = vadd.f32 %v735_v53, %v3901_v51  ;;  %v825_v61 = vadd.f32 %v824_v55, %v3903_v52  ;;  %v4163_v32 = vpop.f32.mrf.mxu3  ;;  %v2180_v53 = vadd.f32 %v2179_v14, %v2178_v0  ;;  %v3510_v0 = vld [vmem:[%s4845_s11 + $0x48] sm:$0xff]  ;;  %v2223_v14 = vld [vmem:[%s4847_s13 + $0x30] sm:$0xff] }
 0x10e   : > { %2541 = vmatpush.bf16.msrb.mxu3 %v3510_v0  ;;  %2242 = vmatpush.msrb.mxu1 %v2223_v14 }
 0x10f   : > { %v898_v7 = vmax.f32 %v736_v58, 0.0  ;;  %v899_v8 = vmax.f32 %v825_v61, 0.0  ;;  %v2186_v58 = vmul.f32 %v4154_v50, %v2185_v33  ;;  %v3502_v61 = vld [vmem:[%s4845_s11 + $0x8] sm:$0xff]  ;;  %v1604_v33 = vmax.f32 %v1528_v1, 0.0 }
 0x110   : > { %2452 = vmatpush.bf16.msrb.mxu2 %v3502_v61 }
 0x111   : > { %v949_v11 = vpack.c.bf16 %v899_v8, %v898_v7  ;;  %v1530_v7 = vadd.f32 %v3948_v45, %v4023_v17  ;;  %v1174_v8 = vadd.f32 %v4177_v49, %v3953_v54  ;;  %v3501_v54 = vld [vmem:[%s4845_s11] sm:$0xff] }
 0x112   : > { %2542 = vmatpush.bf16.msrb.mxu3 %v3509_v26 }
 0x113   : > { %v1724_v15 = vunpack.c.l.b16 %v949_v11  ;;  %v1725_v21 = vunpack.c.h.b16 %v949_v11  ;;  %v2181_v11 = vrot.slane %v2180_v53, 1  ;;  %v1605_v22 = vmax.f32 %v1530_v7, 0.0 }
 0x114   : > { %v738_v38 = vpop.f32.mrf.mxu0  ;;  %v827_v41 = vpop.f32.mrf.mxu1  ;;  %2453 = vmatpush.bf16.msrb.mxu2 %v3501_v54  ;;  %v1636_v7 = vpack.c.bf16 %v1604_v33, %v1604_v33 }
 0x115   : > { %v4172_v43 = vpack.c.b16 %v1724_v15, %v1722_v37  ;;  %v4179_v55 = vpack.c.b16 %v1725_v21, %v1723_v42  ;;  %v739_v56 = vadd.f32 %v738_v38, %v3901_v51  ;;  %v828_v57 = vadd.f32 %v827_v41, %v3903_v52  ;;  %v4203_v21 = vpop.f32.mrf.mxu2  ;;  %v4205_v17 = vpop.f32.mrf.mxu3  ;;  %v3467_v38 = vld [vmem:[%s3846_s21 + $0x70] sm:$0xff] }
 0x116   : > { %v3491_v41 = vld [vmem:[%s3852_s9 + $0x70] sm:$0xff]  ;;  %v2182_v61 = vadd.f32 %v2181_v11, %v2180_v53  ;;  %v1956_v11 = vunpack.c.l.b16 %v1636_v7 }
 0x117   : > { %4864 = vst [vmem:[#allocation11_spill] sm:$0xff] %v4172_v43  ;;  %3094 = vmatmul.msk.bf16.gmra.mxu0 %vm638_vm1, %v3452_v29  ;;  %3110 = vmatmul.msk.bf16.gmra.mxu1 %vm638_vm1, %v3452_v29  ;;  %v900_v15 = vmax.f32 %v739_v56, 0.0  ;;  %v901_v63 = vmax.f32 %v828_v57, 0.0  ;;  %v2187_v29 = vadd.f32 %v4154_v50, %v2186_v58  ;;  %v1253_v57 = vmax.f32 %v1174_v8, 0.0 }
 0x118   : > { %4865 = vst [vmem:[#allocation12_spill] sm:$0xff] %v4179_v55  ;;  %v1254_v58 = vmax.f32 %v1176_v10, 0.0  ;;  %v1637_v55 = vpack.c.bf16 %v1605_v22, %v1605_v22  ;;  %1242 = vmatmul.bf16.gmra.mxu2 %v3467_v38  ;;  %v1533_v38 = vadd.f32 %v3948_v45, %v4037_v3 }
 0x119   : > { %v950_v0 = vpack.c.bf16 %v901_v63, %v900_v15  ;;  %v2189_v1 = vsel %vm2188_vm2, %v4154_v50, %v2187_v29  ;;  %1591 = vmatmul.bf16.gmra.mxu3 %v3491_v41  ;;  %v1285_v30 = vpack.c.bf16 %v1253_v57, %v1253_v57  ;;  %v2222_v41 = vld [vmem:[%s4847_s13 + $0x28] sm:$0xff] }
 0x11a   : > { %v1286_v24 = vpack.c.bf16 %v1254_v58, %v1254_v58  ;;  %v1957_v15 = vunpack.c.l.b16 %v1637_v55  ;;  %v1535_v55 = vadd.f32 %v3948_v45, %v4066_v40  ;;  %2243 = vmatpush.msrb.mxu1 %v2222_v41  ;;  %v1606_v40 = vmax.f32 %v1533_v38, 0.0 }
 0x11b   : > { %v1726_v53 = vunpack.c.l.b16 %v950_v0  ;;  %v1727_v10 = vunpack.c.h.b16 %v950_v0 }
 0x11c   : > { %v740_v34 = vpop.f32.mrf.mxu0  ;;  %v829_v37 = vpop.f32.mrf.mxu1  ;;  %v1859_v33 = vunpack.c.l.b16 %v1286_v24  ;;  %v1181_v24 = vadd.f32 %v4177_v49, %v4021_v36 }
 0x11d   : > { %v741_v42 = vadd.f32 %v740_v34, %v3901_v51  ;;  %v830_v56 = vadd.f32 %v829_v37, %v3903_v52  ;;  %v2190_v34 = vmul.f32 %v2189_v1, %v2182_v61  ;;  %v4220_v54 = vpop.f32.mrf.mxu2  ;;  %v4222_v8 = vpop.f32.mrf.mxu3  ;;  %v1607_v61 = vmax.f32 %v1535_v55, 0.0  ;;  %v3492_v1 = vld [vmem:[%s3852_s9 + $0x78] sm:$0xff]  ;;  %s4672_s9 = scalar_lea.vmem [#allocation2], %s3008_s28 }
 0x11e   : > { %s2915_s25 = sshll.u32 %s4672_s9, 4  ;;  %s2916_s25 = int_to_ptr.vmem [resolvable:$true] %s2915_s25 }
 0x11f   : > { %v902_v14 = vmax.f32 %v741_v42, 0.0  ;;  %v903_v6 = vmax.f32 %v830_v56, 0.0 }
 0x121   : > { %v951_v43 = vpack.c.bf16 %v903_v6, %v902_v14  ;;  %v1858_v6 = vunpack.c.l.b16 %v1285_v30  ;;  %v1179_v30 = vadd.f32 %v4177_v49, %v3995_v62  ;;  %v3468_v62 = vld [vmem:[%s3846_s21 + $0x78] sm:$0xff]  ;;  %s3533_s21 = sshll.u32 %s3746_s17, 8  ;;  %s2903_s17 = scalar_lea.sflag [#allocation3], %s491_s27 }
 0x122   : > { %s2914_s20 = scalar_lea.hbm %s4848_s14, %s3533_s21  ;;  %s3603_s21 = scalar_lea.hbm %s4848_s14, 512 }
 0x123   : > { %v1728_v31 = vunpack.c.l.b16 %v951_v43  ;;  %v1729_v37 = vunpack.c.h.b16 %v951_v43  ;;  %v1890_v42 = vpack.c.b16 %v1859_v33, %v1858_v6  ;;  %s2917_s15 = sshll.u32 %s2914_s20, 4  ;;  %s2918_s15 = int_to_ptr.hbm [resolvable:$true] %s2917_s15 }
 0x124   : > { %v743_v63 = vpop.f32.mrf.mxu0  ;;  %v832_v50 = vpop.f32.mrf.mxu1  ;;  %s3597_s22 = sshra.s32 %s2918_s15, 4  ;;  %s3598_s22 = int_to_ptr.hbm [resolvable:$true] %s3597_s22 }
 0x125   : > { %v4224_v29 = vpack.c.b16 %v1728_v31, %v1726_v53  ;;  %v4226_v26 = vpack.c.b16 %v1729_v37, %v1727_v10  ;;  %v744_v22 = vadd.f32 %v743_v63, %v3901_v51  ;;  %v833_v43 = vadd.f32 %v832_v50, %v3903_v52  ;;  %v4244_v57 = vpop.f32.mrf.mxu2  ;;  %v4246_v58 = vpop.f32.mrf.mxu3  ;;  %s3599_s0 = scalar_lea.hbm %s3598_s22, 256  ;;  %p3604_p0 = scmp.lt.s32.totalorder %s3598_s22, %s4848_s14 }
 0x126   : > { %v4235_v31 = vpack.c.b16 %v1957_v15, %v1956_v11  ;;  %v1256_v37 = vmax.f32 %v1181_v24, 0.0  ;;  %v1638_v15 = vpack.c.bf16 %v1606_v40, %v1606_v40  ;;  %v1639_v63 = vpack.c.bf16 %v1607_v61, %v1607_v61  ;;  %p3600_p11 = scmp.ne.s32.totalorder %s3598_s22, %s3599_s0  ;;  %p3605_p1 = scmp.lt.s32.totalorder %s3603_s21, %s3599_s0 }
 0x127   : > { %3303 = vmatmul.msk.f32.vlgmr.msrb.gmra.mxu0 %vm638_vm1, %v2190_v34  ;;  %v904_v56 = vmax.f32 %v744_v22, 0.0  ;;  %v905_v3 = vmax.f32 %v833_v43, 0.0  ;;  %v1255_v34 = vmax.f32 %v1179_v30, 0.0 }
 0x128   : > { %1247 = vmatmul.bf16.gmra.mxu2 %v3468_v62  ;;  %v1288_v33 = vpack.c.bf16 %v1256_v37, %v1256_v37  ;;  %v1959_v30 = vunpack.c.l.b16 %v1639_v63  ;;  %v1184_v37 = vadd.f32 %v4177_v49, %v4035_v2  ;;  %p3601_p12 = pnand %p3600_p11, %p3763_p5  ;;  %p3606_p2 = por %p3605_p1, %p3604_p0 }
 0x129   : > { %v952_v53 = vpack.c.bf16 %v905_v3, %v904_v56  ;;  %1596 = vmatmul.bf16.gmra.mxu3 %v3492_v1  ;;  %v1287_v6 = vpack.c.bf16 %v1255_v34, %v1255_v34 }
 0x12a   : > { %p3602_p13 = pneg %p3601_p12 }
 0x12b   : > { %v1730_v55 = vunpack.c.l.b16 %v952_v53  ;;  %v1731_v41 = vunpack.c.h.b16 %v952_v53  ;;  %v1860_v61 = vunpack.c.l.b16 %v1287_v6  ;;  %v1186_v53 = vadd.f32 %v4177_v49, %v4064_v39 }
 0x12c   : > { %v745_v0 = vpop.f32.mrf.mxu0  ;;  %v834_v14 = vpop.f32.mrf.mxu1  ;;  %p3607_p3 = pnand %p3606_p2, %p3602_p13 }
 0x12d   : > { %v746_v36 = vadd.f32 %v745_v0, %v3901_v51  ;;  %v835_v7 = vadd.f32 %v834_v14, %v3903_v52  ;;  %v4252_v38 = vpop.f32.mrf.mxu2  ;;  %v1958_v0 = vunpack.c.l.b16 %v1638_v15  ;;  %v4254_v3 = vpop.f32.mrf.mxu3  ;;  %v1861_v14 = vunpack.c.l.b16 %v1288_v33 }
 0x12e   : > { %v1258_v39 = vmax.f32 %v1186_v53, 0.0 }
 0x12f   : > { %v906_v10 = vmax.f32 %v746_v36, 0.0  ;;  %v907_v11 = vmax.f32 %v835_v7, 0.0  ;;  %2632 = vmatmul.bf16.vlgmr.msra.gmra.mxu0 %v1890_v42  ;;  %v1538_v36 = vadd.f32 %v3948_v45, %v4083_v60  ;;  %v1540_v7 = vadd.f32 %v3948_v45, %v4104_v28 }
 0x130   : > { %v4266_v34 = vpack.c.b16 %v1959_v30, %v1958_v0  ;;  %v1891_v60 = vpack.c.b16 %v1861_v14, %v1860_v61 }
 0x131   : > { %v953_v50 = vpack.c.bf16 %v907_v11, %v906_v10  ;;  %v2221_v10 = vld [vmem:[%s4847_s13 + $0x20] sm:$0xff]  ;;  %v1609_v28 = vmax.f32 %v1540_v7, 0.0 }
 0x132   : > { %2244 = vmatpush.msrb.mxu1 %v2221_v10 }
 0x133   : > { %v1732_v22 = vunpack.c.l.b16 %v953_v50  ;;  %v1733_v43 = vunpack.c.h.b16 %v953_v50  ;;  %v1608_v50 = vmax.f32 %v1538_v36, 0.0 }
 0x134   : > { %v748_v24 = vpop.f32.mrf.mxu0  ;;  %v837_v56 = vpop.f32.mrf.mxu1 }
 0x135   : > { %v4256_v42 = vpack.c.b16 %v1732_v22, %v1730_v55  ;;  %v4258_v40 = vpack.c.b16 %v1733_v43, %v1731_v41  ;;  %v749_v62 = vadd.f32 %v748_v24, %v3901_v51  ;;  %v838_v1 = vadd.f32 %v837_v56, %v3903_v52  ;;  %v4275_v63 = vpop.f32.mrf.mxu2  ;;  %v4279_v41 = vpop.f32.mrf.mxu3 }
 0x136   : > { %v1257_v43 = vmax.f32 %v1184_v37, 0.0  ;;  %v1640_v24 = vpack.c.bf16 %v1608_v50, %v1608_v50  ;;  %v1641_v56 = vpack.c.bf16 %v1609_v28, %v1609_v28 }
 0x137   : > { %v908_v11 = vmax.f32 %v749_v62, 0.0  ;;  %v909_v15 = vmax.f32 %v838_v1, 0.0  ;;  %v1290_v62 = vpack.c.bf16 %v1258_v39, %v1258_v39 }
 0x138   : > { %2454 = vmatmul.bf16.vlgmr.msrb.gmra.mxu2 %v3926_v18  ;;  %v1289_v14 = vpack.c.bf16 %v1257_v43, %v1257_v43  ;;  %v1960_v10 = vunpack.c.l.b16 %v1640_v24 }
 0x139   : > { %v954_v55 = vpack.c.bf16 %v909_v15, %v908_v11  ;;  %2543 = vmatmul.bf16.vlgmr.msrb.gmra.mxu3 %v3928_v19  ;;  %v1961_v11 = vunpack.c.l.b16 %v1641_v56  ;;  %v1863_v28 = vunpack.c.l.b16 %v1290_v62 }
 0x13a   : > { %v1862_v18 = vunpack.c.l.b16 %v1289_v14 }
 0x13b   : > { %v1734_v37 = vunpack.c.l.b16 %v954_v55  ;;  %v1735_v53 = vunpack.c.h.b16 %v954_v55  ;;  %v4295_v43 = vpack.c.b16 %v1961_v11, %v1960_v10  ;;  %v1189_v55 = vadd.f32 %v4177_v49, %v4081_v59 }
 0x13c   : > { %v750_v6 = vpop.f32.mrf.mxu0  ;;  %v839_v33 = vpop.f32.mrf.mxu1 }
 0x13d   : > { %v751_v22 = vadd.f32 %v750_v6, %v3901_v51  ;;  %v840_v2 = vadd.f32 %v839_v33, %v3903_v52  ;;  %v4283_v7 = vpop.f32.mrf.mxu2  ;;  %v4297_v39 = vpop.f32.mrf.mxu3 }
 0x13f   : > { %v910_v0 = vmax.f32 %v751_v22, 0.0  ;;  %v911_v30 = vmax.f32 %v840_v2, 0.0  ;;  %2637 = vmatmul.bf16.gmra.mxu0 %v1891_v60  ;;  %v1543_v22 = vadd.f32 %v3948_v45, %v4120_v5  ;;  %v1545_v2 = vadd.f32 %v3948_v45, %v4149_v48 }
 0x140   : > { %v1892_v5 = vpack.c.b16 %v1863_v28, %v1862_v18 }
 0x141   : > { %v955_v61 = vpack.c.bf16 %v911_v30, %v910_v0  ;;  %v1191_v0 = vadd.f32 %v4177_v49, %v4102_v27  ;;  %v2220_v30 = vld [vmem:[%s4847_s13 + $0x18] sm:$0xff]  ;;  %v1611_v45 = vmax.f32 %v1545_v2, 0.0 }
 0x142   : > { %2245 = vmatpush.msrb.mxu1 %v2220_v30 }
 0x143   : > { %v1736_v1 = vunpack.c.l.b16 %v955_v61  ;;  %v1737_v36 = vunpack.c.h.b16 %v955_v61  ;;  %v1610_v61 = vmax.f32 %v1543_v22, 0.0  ;;  %v1260_v27 = vmax.f32 %v1191_v0, 0.0 }
 0x144   : > { %v753_v15 = vpop.f32.mrf.mxu0  ;;  %v842_v6 = vpop.f32.mrf.mxu1 }
 0x145   : > { %v4285_v60 = vpack.c.b16 %v1736_v1, %v1734_v37  ;;  %v4287_v50 = vpack.c.b16 %v1737_v36, %v1735_v53  ;;  %v754_v19 = vadd.f32 %v753_v15, %v3901_v51  ;;  %v843_v33 = vadd.f32 %v842_v6, %v3903_v52  ;;  %v4306_v62 = vpop.f32.mrf.mxu2 }
 0x146   : > { %v1259_v36 = vmax.f32 %v1189_v55, 0.0  ;;  %v1642_v11 = vpack.c.bf16 %v1610_v61, %v1610_v61  ;;  %v1643_v15 = vpack.c.bf16 %v1611_v45, %v1611_v45  ;;  %v1292_v28 = vpack.c.bf16 %v1260_v27, %v1260_v27 }
 0x147   : > { %v912_v24 = vmax.f32 %v754_v19, 0.0  ;;  %v913_v56 = vmax.f32 %v843_v33, 0.0  ;;  %v4312_v19 = vpop.f32.mrf.mxu3 }
 0x148   : > { %2459 = vmatmul.bf16.gmra.mxu2 %v3962_v9  ;;  %v1291_v18 = vpack.c.bf16 %v1259_v36, %v1259_v36  ;;  %v1962_v0 = vunpack.c.l.b16 %v1642_v11  ;;  %v1963_v30 = vunpack.c.l.b16 %v1643_v15  ;;  %v1865_v45 = vunpack.c.l.b16 %v1292_v28 }
 0x149   : > { %v956_v37 = vpack.c.bf16 %v913_v56, %v912_v24  ;;  %2548 = vmatmul.bf16.gmra.mxu3 %v3967_v16 }
 0x14a   : > { %v1864_v9 = vunpack.c.l.b16 %v1291_v18  ;;  %v4331_v27 = vpack.c.b16 %v1963_v30, %v1962_v0 }
 0x14b   : > { %v1738_v2 = vunpack.c.l.b16 %v956_v37  ;;  %v1739_v55 = vunpack.c.h.b16 %v956_v37  ;;  %v1194_v37 = vadd.f32 %v4177_v49, %v4118_v4 }
 0x14c   : > { %v755_v48 = vpop.f32.mrf.mxu0  ;;  %v844_v14 = vpop.f32.mrf.mxu1 }
 0x14d   : > { %v756_v1 = vadd.f32 %v755_v48, %v3901_v51  ;;  %v845_v59 = vadd.f32 %v844_v14, %v3903_v52  ;;  %v4318_v16 = vpop.f32.mrf.mxu2 }
 0x14f   : > { %v914_v53 = vmax.f32 %v756_v1, 0.0  ;;  %v915_v10 = vmax.f32 %v845_v59, 0.0  ;;  %2642 = vmatmul.bf16.gmra.mxu0 %v1892_v5  ;;  %v4325_v1 = vld [vmem:[%s4842_s8] ss:$0 sm:$0xff] }
 0x150   : > { %v1548_v59 = vadd.f32 %v4325_v1, %v4163_v32  ;;  %v1550_v36 = vadd.f32 %v4325_v1, %v4205_v17 }
 0x151   : > { %v957_v6 = vpack.c.bf16 %v915_v10, %v914_v53  ;;  %v1196_v53 = vadd.f32 %v4177_v49, %v4147_v47  ;;  %v2219_v10 = vld [vmem:[%s4847_s13 + $0x10] sm:$0xff] }
 0x152   : > { %2246 = vmatpush.msrb.mxu1 %v2219_v10  ;;  %v1612_v32 = vmax.f32 %v1548_v59, 0.0  ;;  %v1613_v18 = vmax.f32 %v1550_v36, 0.0 }
 0x153   : > { %v1740_v33 = vunpack.c.l.b16 %v957_v6  ;;  %v1741_v22 = vunpack.c.h.b16 %v957_v6  ;;  %v1893_v6 = vpack.c.b16 %v1865_v45, %v1864_v9  ;;  %v1262_v47 = vmax.f32 %v1196_v53, 0.0 }
 0x154   : > { %v758_v24 = vpop.f32.mrf.mxu0  ;;  %v847_v56 = vpop.f32.mrf.mxu1 }
 0x155   : > { %v4314_v5 = vpack.c.b16 %v1740_v33, %v1738_v2  ;;  %v4316_v61 = vpack.c.b16 %v1741_v22, %v1739_v55  ;;  %v759_v48 = vadd.f32 %v758_v24, %v3901_v51  ;;  %v848_v14 = vadd.f32 %v847_v56, %v3903_v52  ;;  %v4340_v33 = vpop.f32.mrf.mxu3  ;;  %v4346_v9 = vpop.f32.mrf.mxu2 }
 0x156   : > { %v1261_v2 = vmax.f32 %v1194_v37, 0.0  ;;  %v1644_v24 = vpack.c.bf16 %v1612_v32, %v1612_v32  ;;  %v1645_v56 = vpack.c.bf16 %v1613_v18, %v1613_v18 }
 0x157   : > { %v916_v11 = vmax.f32 %v759_v48, 0.0  ;;  %v917_v15 = vmax.f32 %v848_v14, 0.0  ;;  %v1294_v14 = vpack.c.bf16 %v1262_v47, %v1262_v47 }
 0x158   : > { %2464 = vmatmul.bf16.gmra.mxu2 %v4008_v20  ;;  %v1293_v48 = vpack.c.bf16 %v1261_v2, %v1261_v2  ;;  %v1964_v53 = vunpack.c.l.b16 %v1644_v24  ;;  %v1555_v2 = vadd.f32 %v4325_v1, %v4246_v58 }
 0x159   : > { %v958_v55 = vpack.c.bf16 %v917_v15, %v916_v11  ;;  %2553 = vmatmul.bf16.gmra.mxu3 %v4019_v35  ;;  %v1965_v11 = vunpack.c.l.b16 %v1645_v56  ;;  %v1867_v18 = vunpack.c.l.b16 %v1294_v14 }
 0x15a   : > { %v1866_v20 = vunpack.c.l.b16 %v1293_v48  ;;  %v1615_v58 = vmax.f32 %v1555_v2, 0.0 }
 0x15b   : > { %v1742_v10 = vunpack.c.l.b16 %v958_v55  ;;  %v1743_v37 = vunpack.c.h.b16 %v958_v55  ;;  %v4360_v47 = vpack.c.b16 %v1965_v11, %v1964_v53  ;;  %v1199_v55 = vadd.f32 %v4177_v49, %v4161_v23 }
 0x15c   : > { %v760_v28 = vpop.f32.mrf.mxu0  ;;  %v849_v17 = vpop.f32.mrf.mxu1  ;;  %v724_v11 = vadd.f32 %v4041_v12, %v3901_v51 }
 0x15d   : > { %v761_v22 = vadd.f32 %v760_v28, %v3901_v51  ;;  %v850_v4 = vadd.f32 %v849_v17, %v3903_v52  ;;  %v4352_v35 = vpop.f32.mrf.mxu3  ;;  %v4369_v24 = vpop.f32.mrf.mxu2 }
 0x15f   : > { %v918_v0 = vmax.f32 %v761_v22, 0.0  ;;  %v919_v30 = vmax.f32 %v850_v4, 0.0  ;;  %2647 = vmatmul.bf16.gmra.mxu0 %v1893_v6  ;;  %v1553_v4 = vadd.f32 %v4325_v1, %v4222_v8  ;;  %v1894_v8 = vpack.c.b16 %v1867_v18, %v1866_v20 }
 0x160   : > { %v813_v18 = vadd.f32 %v4043_v13, %v3903_v52 }
 0x161   : > { %v959_v45 = vpack.c.bf16 %v919_v30, %v918_v0  ;;  %v1201_v0 = vadd.f32 %v4177_v49, %v4203_v21  ;;  %v2218_v30 = vld [vmem:[%s4847_s13 + $0x8] sm:$0xff]  ;;  %v1614_v48 = vmax.f32 %v1553_v4, 0.0  ;;  %v726_v21 = vadd.f32 %v4070_v44, %v3901_v51 }
 0x162   : > { %2247 = vmatpush.msrb.mxu1 %v2218_v30  ;;  %v4866_v44 = vld [vmem:[#allocation8_spill] sm:$0xff] }
 0x163   : > { %v1744_v59 = vunpack.c.l.b16 %v959_v45  ;;  %v1745_v36 = vunpack.c.h.b16 %v959_v45  ;;  %v1264_v53 = vmax.f32 %v1201_v0, 0.0  ;;  %v890_v2 = vmax.f32 %v726_v21, 0.0  ;;  %v3532_v21 = vld [vmem:[%s4845_s11 + $0xf8] sm:$0xff] }
 0x164   : > { %v763_v15 = vpop.f32.mrf.mxu0  ;;  %v852_v28 = vpop.f32.mrf.mxu1 }
 0x165   : > { %v4348_v6 = vpack.c.b16 %v1744_v59, %v1742_v10  ;;  %v4350_v32 = vpack.c.b16 %v1745_v36, %v1743_v37  ;;  %v764_v17 = vadd.f32 %v763_v15, %v3901_v51  ;;  %v853_v22 = vadd.f32 %v852_v28, %v3903_v52  ;;  %v4383_v4 = vpop.f32.mrf.mxu3 }
 0x166   : > { %v815_v10 = vadd.f32 %v4072_v46, %v3903_v52  ;;  %v1263_v37 = vmax.f32 %v1199_v55, 0.0  ;;  %v1296_v12 = vpack.c.bf16 %v1264_v53, %v1264_v53 }
 0x167   : > { %v920_v56 = vmax.f32 %v764_v17, 0.0  ;;  %v921_v45 = vmax.f32 %v853_v22, 0.0  ;;  %v1646_v17 = vpack.c.bf16 %v1614_v48, %v1614_v48  ;;  %v1647_v22 = vpack.c.bf16 %v1615_v58, %v1615_v58 }
 0x168   : > { %2469 = vmatmul.bf16.gmra.mxu2 %v4047_v25  ;;  %v891_v55 = vmax.f32 %v815_v10, 0.0  ;;  %v1295_v0 = vpack.c.bf16 %v1263_v37, %v1263_v37  ;;  %v888_v48 = vmax.f32 %v724_v11, 0.0  ;;  %v889_v58 = vmax.f32 %v813_v18, 0.0 }
 0x169   : > { %v960_v15 = vpack.c.bf16 %v921_v45, %v920_v56  ;;  %2558 = vmatmul.bf16.gmra.mxu3 %v4866_v44  ;;  %v2217_v45 = vld [vmem:[%s4847_s13] sm:$0xff]  ;;  %v1966_v25 = vunpack.c.l.b16 %v1646_v17  ;;  %v1558_v17 = vadd.f32 %v4325_v1, %v4254_v3 }
 0x16a   : > { %2248 = vmatpush.msrb.mxu1 %v2217_v45  ;;  %v945_v53 = vpack.c.bf16 %v891_v55, %v890_v2  ;;  %v944_v18 = vpack.c.bf16 %v889_v58, %v888_v48 }
 0x16b   : > { %v1746_v13 = vunpack.c.l.b16 %v960_v15 }
 0x16c   : > { %v765_v14 = vpop.f32.mrf.mxu0  ;;  %v854_v59 = vpop.f32.mrf.mxu1  ;;  %2713 = vmatpush.bf16.msra.mxu1 %v3532_v21  ;;  %v1716_v2 = vunpack.c.l.b16 %v945_v53  ;;  %v1717_v55 = vunpack.c.h.b16 %v945_v53  ;;  %v1714_v58 = vunpack.c.l.b16 %v944_v18 }
 0x16d   : > { %v766_v36 = vadd.f32 %v765_v14, %v3901_v51  ;;  %v855_v23 = vadd.f32 %v854_v59, %v3903_v52  ;;  %v1967_v14 = vunpack.c.l.b16 %v1647_v22  ;;  %v1560_v22 = vadd.f32 %v4325_v1, %v4279_v41 }
 0x16e   : > { %v1616_v41 = vmax.f32 %v1558_v17, 0.0  ;;  %v1770_v21 = vpack.c.b16 %v1716_v2, %v1714_v58 }
 0x16f   : > { %v922_v28 = vmax.f32 %v766_v36, 0.0  ;;  %v923_v20 = vmax.f32 %v855_v23, 0.0  ;;  %2652 = vmatmul.bf16.gmra.mxu0 %v1894_v8  ;;  %v1747_v8 = vunpack.c.h.b16 %v960_v15  ;;  %v4388_v23 = vpop.f32.mrf.mxu2  ;;  %v1869_v15 = vunpack.c.l.b16 %v1296_v12 }
 0x170   : > { %v4403_v44 = vpack.c.b16 %v1967_v14, %v1966_v25  ;;  %v1206_v12 = vadd.f32 %v4177_v49, %v4244_v57  ;;  %v1715_v25 = vunpack.c.h.b16 %v944_v18  ;;  %v1648_v18 = vpack.c.bf16 %v1616_v41, %v1616_v41  ;;  %v3528_v41 = vld [vmem:[%s4845_s11 + $0xd8] sm:$0xff] }
 0x171   : > { %v961_v46 = vpack.c.bf16 %v923_v20, %v922_v28  ;;  %v1868_v28 = vunpack.c.l.b16 %v1295_v0  ;;  %v1204_v0 = vadd.f32 %v4177_v49, %v4220_v54  ;;  %v3530_v54 = vld [vmem:[%s4845_s11 + $0xe8] sm:$0xff] }
 0x172   : > { %v1771_v53 = vpack.c.b16 %v1717_v55, %v1715_v25 }
 0x173   : > { %v1748_v30 = vunpack.c.l.b16 %v961_v46  ;;  %v1749_v56 = vunpack.c.h.b16 %v961_v46  ;;  %v3531_v46 = vld [vmem:[%s4845_s11 + $0xf0] sm:$0xff]  ;;  %v1895_v45 = vpack.c.b16 %v1869_v15, %v1868_v28  ;;  %v1265_v57 = vmax.f32 %v1204_v0, 0.0 }
 0x174   : > { %v768_v59 = vpop.f32.mrf.mxu0  ;;  %v857_v36 = vpop.f32.mrf.mxu1  ;;  %2714 = vmatpush.bf16.msra.mxu1 %v3531_v46  ;;  %v3529_v46 = vld [vmem:[%s4845_s11 + $0xe0] sm:$0xff] }
 0x175   : > { %v4393_v10 = vpack.c.b16 %v1748_v30, %v1746_v13  ;;  %v4395_v37 = vpack.c.b16 %v1749_v56, %v1747_v8  ;;  %v769_v11 = vadd.f32 %v768_v59, %v3901_v51  ;;  %v858_v20 = vadd.f32 %v857_v36, %v3903_v52  ;;  %v4412_v30 = vpop.f32.mrf.mxu3 }
 0x176   : > { %v1617_v13 = vmax.f32 %v1560_v22, 0.0  ;;  %v1266_v36 = vmax.f32 %v1206_v12, 0.0  ;;  %v1297_v0 = vpack.c.bf16 %v1265_v57, %v1265_v57 }
 0x177   : > { %v924_v3 = vmax.f32 %v769_v11, 0.0  ;;  %v925_v56 = vmax.f32 %v858_v20, 0.0  ;;  %v4419_v28 = vpop.f32.mrf.mxu2 }
 0x178   : > { %2715 = vmatpush.bf16.msra.mxu1 %v3530_v54  ;;  %v1649_v17 = vpack.c.bf16 %v1617_v13, %v1617_v13  ;;  %2474 = vmatmul.bf16.gmra.mxu2 %v1770_v21  ;;  %v1298_v12 = vpack.c.bf16 %v1266_v36, %v1266_v36  ;;  %v1563_v21 = vadd.f32 %v4325_v1, %v4297_v39 }
 0x179   : > { %v962_v15 = vpack.c.bf16 %v925_v56, %v924_v3  ;;  %2563 = vmatmul.bf16.gmra.mxu3 %v1771_v53  ;;  %v1968_v56 = vunpack.c.l.b16 %v1648_v18  ;;  %v1565_v53 = vadd.f32 %v4325_v1, %v4312_v19  ;;  %v1209_v18 = vadd.f32 %v4177_v49, %v4252_v38 }
 0x17a   : > { %v1871_v54 = vunpack.c.l.b16 %v1298_v12 }
 0x17b   : > { %v1751_v3 = vunpack.c.h.b16 %v962_v15  ;;  %v1619_v19 = vmax.f32 %v1565_v53, 0.0  ;;  %v1267_v38 = vmax.f32 %v1209_v18, 0.0 }
 0x17c   : > { %v770_v8 = vpop.f32.mrf.mxu0  ;;  %v859_v48 = vpop.f32.mrf.mxu1  ;;  %2716 = vmatpush.bf16.msra.mxu1 %v3529_v46 }
 0x17d   : > { %v771_v14 = vadd.f32 %v770_v8, %v3901_v51  ;;  %v860_v59 = vadd.f32 %v859_v48, %v3903_v52  ;;  %v1750_v8 = vunpack.c.l.b16 %v962_v15  ;;  %v1969_v48 = vunpack.c.l.b16 %v1649_v17 }
 0x17e   : > { %v1211_v17 = vadd.f32 %v4177_v49, %v4275_v63  ;;  %v1299_v53 = vpack.c.bf16 %v1267_v38, %v1267_v38 }
 0x17f   : > { %v926_v11 = vmax.f32 %v771_v14, 0.0  ;;  %v927_v20 = vmax.f32 %v860_v59, 0.0  ;;  %2657 = vmatmul.bf16.gmra.mxu0 %v1895_v45  ;;  %v4431_v14 = vpop.f32.mrf.mxu3  ;;  %v1870_v59 = vunpack.c.l.b16 %v1297_v0  ;;  %v4439_v15 = vpack.c.b16 %v1969_v48, %v1968_v56 }
 0x180   : > { %2717 = vmatpush.bf16.msra.mxu1 %v3528_v41  ;;  %v1618_v0 = vmax.f32 %v1563_v21, 0.0  ;;  %v1268_v56 = vmax.f32 %v1211_v17, 0.0  ;;  %v1651_v41 = vpack.c.bf16 %v1619_v19, %v1619_v19  ;;  %v3525_v21 = vld [vmem:[%s4845_s11 + $0xc0] sm:$0xff] }
 0x181   : > { %v963_v22 = vpack.c.bf16 %v927_v20, %v926_v11  ;;  %v4441_v11 = vpop.f32.mrf.mxu2  ;;  %v3527_v20 = vld [vmem:[%s4845_s11 + $0xd0] sm:$0xff]  ;;  %v1896_v39 = vpack.c.b16 %v1871_v54, %v1870_v59 }
 0x182   : > { %v4867_v54 = vld [vmem:[#allocation9_spill] sm:$0xff]  ;;  %v1971_v19 = vunpack.c.l.b16 %v1651_v41  ;;  %v1214_v41 = vadd.f32 %v4177_v49, %v4283_v7 }
 0x183   : > { %v1752_v2 = vunpack.c.l.b16 %v963_v22  ;;  %v1753_v55 = vunpack.c.h.b16 %v963_v22 }
 0x184   : > { %v773_v45 = vpop.f32.mrf.mxu0  ;;  %v862_v58 = vpop.f32.mrf.mxu1  ;;  %2718 = vmatpush.bf16.msra.mxu1 %v3527_v20  ;;  %v1300_v20 = vpack.c.bf16 %v1268_v56, %v1268_v56 }
 0x185   : > { %v4427_v13 = vpack.c.b16 %v1752_v2, %v1750_v8  ;;  %v4429_v25 = vpack.c.b16 %v1753_v55, %v1751_v3  ;;  %v774_v57 = vadd.f32 %v773_v45, %v3901_v51  ;;  %v863_v36 = vadd.f32 %v862_v58, %v3903_v52  ;;  %v3526_v3 = vld [vmem:[%s4845_s11 + $0xc8] sm:$0xff] }
 0x186   : > { %v1650_v58 = vpack.c.bf16 %v1618_v0, %v1618_v0 }
 0x187   : > { %v928_v22 = vmax.f32 %v774_v57, 0.0  ;;  %v929_v46 = vmax.f32 %v863_v36, 0.0  ;;  %v4455_v59 = vpop.f32.mrf.mxu3  ;;  %v4868_v57 = vld [vmem:[#allocation10_spill] sm:$0xff] }
 0x188   : > { %2719 = vmatpush.bf16.msra.mxu1 %v3526_v3  ;;  %2479 = vmatmul.bf16.gmra.mxu2 %v4867_v54  ;;  %v1970_v0 = vunpack.c.l.b16 %v1650_v58  ;;  %v1872_v3 = vunpack.c.l.b16 %v1299_v53  ;;  %v1216_v54 = vadd.f32 %v4177_v49, %v4306_v62 }
 0x189   : > { %v964_v48 = vpack.c.bf16 %v929_v46, %v928_v22  ;;  %2568 = vmatmul.bf16.gmra.mxu3 %v4868_v57  ;;  %v4462_v18 = vpop.f32.mrf.mxu2 }
 0x18a   : > { %v4474_v58 = vpack.c.b16 %v1971_v19, %v1970_v0  ;;  %v1270_v0 = vmax.f32 %v1216_v54, 0.0 }
 0x18b   : > { %v1754_v46 = vunpack.c.l.b16 %v964_v48 }
 0x18c   : > { %v775_v12 = vpop.f32.mrf.mxu0  ;;  %v864_v2 = vpop.f32.mrf.mxu1  ;;  %2720 = vmatpush.bf16.msra.mxu1 %v3525_v21 }
 0x18d   : > { %v776_v55 = vadd.f32 %v775_v12, %v3901_v51  ;;  %v865_v8 = vadd.f32 %v864_v2, %v3903_v52 }
 0x18f   : > { %v930_v63 = vmax.f32 %v776_v55, 0.0  ;;  %v931_v45 = vmax.f32 %v865_v8, 0.0  ;;  %2662 = vmatmul.bf16.gmra.mxu0 %v1896_v39  ;;  %v1755_v39 = vunpack.c.h.b16 %v964_v48  ;;  %v1570_v48 = vadd.f32 %v4325_v1, %v4352_v35  ;;  %v4480_v57 = vpop.f32.mrf.mxu3 }
 0x191   : > { %v965_v36 = vpack.c.bf16 %v931_v45, %v930_v63  ;;  %v1873_v63 = vunpack.c.l.b16 %v1300_v20  ;;  %v1568_v45 = vadd.f32 %v4325_v1, %v4340_v33  ;;  %v4484_v19 = vpop.f32.mrf.mxu2 }
 0x193   : > { %v1756_v17 = vunpack.c.l.b16 %v965_v36  ;;  %v1757_v22 = vunpack.c.h.b16 %v965_v36  ;;  %v1897_v53 = vpack.c.b16 %v1873_v63, %v1872_v3  ;;  %v1620_v20 = vmax.f32 %v1568_v45, 0.0  ;;  %v4870_v3 = vld [vmem:[#allocation12_spill] sm:$0xff] }
 0x194   : > { %v778_v12 = vpop.f32.mrf.mxu0  ;;  %v867_v2 = vpop.f32.mrf.mxu1 }
 0x195   : > { %v4464_v55 = vpack.c.b16 %v1756_v17, %v1754_v46  ;;  %v4466_v8 = vpack.c.b16 %v1757_v22, %v1755_v39  ;;  %v779_v38 = vadd.f32 %v778_v12, %v3901_v51  ;;  %v868_v56 = vadd.f32 %v867_v2, %v3903_v52 }
 0x196   : > { %v1621_v17 = vmax.f32 %v1570_v48, 0.0  ;;  %v1269_v39 = vmax.f32 %v1214_v41, 0.0  ;;  %v1652_v2 = vpack.c.bf16 %v1620_v20, %v1620_v20  ;;  %v1302_v48 = vpack.c.bf16 %v1270_v0, %v1270_v0 }
 0x197   : > { %v932_v36 = vmax.f32 %v779_v38, 0.0  ;;  %v933_v21 = vmax.f32 %v868_v56, 0.0  ;;  %v4869_v56 = vld [vmem:[#allocation11_spill] sm:$0xff] }
 0x198   : > { %v1653_v38 = vpack.c.bf16 %v1621_v17, %v1621_v17  ;;  %2484 = vmatmul.bf16.gmra.mxu2 %v4869_v56  ;;  %v1301_v45 = vpack.c.bf16 %v1269_v39, %v1269_v39  ;;  %v1875_v39 = vunpack.c.l.b16 %v1302_v48 }
 0x199   : > { %v966_v7 = vpack.c.bf16 %v933_v21, %v932_v36  ;;  %2573 = vmatmul.bf16.gmra.mxu3 %v4870_v3  ;;  %v1972_v21 = vunpack.c.l.b16 %v1652_v2  ;;  %v4499_v56 = vpop.f32.mrf.mxu2  ;;  %v1219_v2 = vadd.f32 %v4177_v49, %v4318_v16 }
 0x19b   : > { %v1758_v54 = vunpack.c.l.b16 %v966_v7  ;;  %v1759_v36 = vunpack.c.h.b16 %v966_v7 }
 0x19c   : > { %v780_v22 = vpop.f32.mrf.mxu0  ;;  %v869_v33 = vpop.f32.mrf.mxu1 }
 0x19d   : > { %v781_v46 = vadd.f32 %v780_v22, %v3901_v51  ;;  %v870_v35 = vadd.f32 %v869_v33, %v3903_v52  ;;  %v2192_v51 = vld [vmem:[%s4844_s10] sm:$0x1]  ;;  %v1973_v22 = vunpack.c.l.b16 %v1653_v38  ;;  %v1221_v38 = vadd.f32 %v4177_v49, %v4346_v9 }
 0x19f   : > { %v934_v12 = vmax.f32 %v781_v46, 0.0  ;;  %v935_v62 = vmax.f32 %v870_v35, 0.0  ;;  %2667 = vmatmul.bf16.gmra.mxu0 %v1897_v53  ;;  %v1584_v53 = vpop.f32.mrf.mxu3  ;;  %v1874_v35 = vunpack.c.l.b16 %v1301_v45  ;;  %v4501_v7 = vpack.c.b16 %v1973_v22, %v1972_v21 }
 0x1a1   : > { %v967_v63 = vpack.c.bf16 %v935_v62, %v934_v12  ;;  %v1573_v12 = vadd.f32 %v4325_v1, %v4383_v4  ;;  %v1575_v62 = vadd.f32 %v4325_v1, %v4412_v30  ;;  %v1898_v3 = vpack.c.b16 %v1875_v39, %v1874_v35  ;;  %v4512_v16 = vpop.f32.mrf.mxu2 }
 0x1a2   : > { %v1271_v4 = vmax.f32 %v1219_v2, 0.0  ;;  %v1580_v35 = vadd.f32 %v4325_v1, %v4455_v59 }
 0x1a3   : > { %v1760_v52 = vunpack.c.l.b16 %v967_v63  ;;  %v1761_v41 = vunpack.c.h.b16 %v967_v63  ;;  %v1622_v63 = vmax.f32 %v1573_v12, 0.0  ;;  %v1623_v45 = vmax.f32 %v1575_v62, 0.0 }
 0x1a4   : > { %v2213_v20 = vpop.f32.mrf.mxu0  ;;  %v1625_v2 = vmax.f32 %v1580_v35, 0.0 }
 0x1a5   : > { %v2214_v17 = vadd.f32 %v2213_v20, %v2192_v51  ;;  %v4491_v33 = vpack.c.b16 %v1760_v52, %v1758_v54  ;;  %v4493_v46 = vpack.c.b16 %v1761_v41, %v1759_v36  ;;  %v1272_v51 = vmax.f32 %v1221_v38, 0.0  ;;  %v4871_v41 = vld [vmem:[#allocation7_spill] sm:$0xff] }
 0x1a6   : > { %v1654_v30 = vpack.c.bf16 %v1622_v63, %v1622_v63  ;;  %v1655_v52 = vpack.c.bf16 %v1623_v45, %v1623_v45  ;;  %v1303_v54 = vpack.c.bf16 %v1271_v4, %v1271_v4  ;;  %v1657_v45 = vpack.c.bf16 %v1625_v2, %v1625_v2 }
 0x1a7   : > { %v2216_v0 = vmax.f32 %v2214_v17, 0.0  ;;  %v4507_v48 = vpop.f32.mrf.mxu3  ;;  %v1304_v9 = vpack.c.bf16 %v1272_v51, %v1272_v51  ;;  %v1578_v17 = vadd.f32 %v4325_v1, %v4431_v14 }
 0x1a8   : > { %2489 = vmatmul.bf16.gmra.mxu2 %v4224_v29  ;;  %v1974_v36 = vunpack.c.l.b16 %v1654_v30  ;;  %v1975_v21 = vunpack.c.l.b16 %v1655_v52  ;;  %v1876_v22 = vunpack.c.l.b16 %v1303_v54  ;;  %v1585_v54 = vadd.f32 %v4325_v1, %v1584_v53 }
 0x1a9   : > { %2249 = vmatmul.f32.vlgmr.msrb.gmra.mxu1 %v2216_v0  ;;  %2578 = vmatmul.bf16.gmra.mxu3 %v4226_v26  ;;  %v1877_v20 = vunpack.c.l.b16 %v1304_v9  ;;  %v1224_v26 = vadd.f32 %v4177_v49, %v4369_v24  ;;  %v1226_v0 = vadd.f32 %v4177_v49, %v4388_v23  ;;  %v1624_v62 = vmax.f32 %v1578_v17, 0.0  ;;  %v4524_v38 = vpop.f32.mrf.mxu2 }
 0x1aa   : > { %v4518_v29 = vpack.c.b16 %v1975_v21, %v1974_v36  ;;  %v1977_v23 = vunpack.c.l.b16 %v1657_v45 }
 0x1ab   : > { %v1899_v12 = vpack.c.b16 %v1877_v20, %v1876_v22  ;;  %v1274_v63 = vmax.f32 %v1226_v0, 0.0  ;;  %v1656_v14 = vpack.c.bf16 %v1624_v62, %v1624_v62  ;;  %v1627_v22 = vmax.f32 %v1585_v54, 0.0 }
 0x1ad   : > { %v1306_v4 = vpack.c.bf16 %v1274_v63, %v1274_v63  ;;  %v1976_v49 = vunpack.c.l.b16 %v1656_v14  ;;  %v1659_v35 = vpack.c.bf16 %v1627_v22, %v1627_v22  ;;  %v1588_v14 = vadd.f32 %v4325_v1, %v4507_v48 }
 0x1af   : > { %2672 = vmatmul.bf16.gmra.mxu0 %v1898_v3  ;;  %v1589_v39 = vpop.f32.mrf.mxu3  ;;  %v1273_v3 = vmax.f32 %v1224_v26, 0.0  ;;  %v1879_v52 = vunpack.c.l.b16 %v1306_v4  ;;  %v4534_v9 = vpack.c.b16 %v1977_v23, %v1976_v49  ;;  %v1628_v49 = vmax.f32 %v1588_v14, 0.0 }
 0x1b0   : > { %v1590_v45 = vadd.f32 %v4325_v1, %v1589_v39 }
 0x1b1   : > { %2721 = vmatmul.bf16.vlgmr.msra.gmra.mxu1 %v4871_v41  ;;  %v1305_v59 = vpack.c.bf16 %v1273_v3, %v1273_v3  ;;  %v4529_v51 = vpop.f32.mrf.mxu2  ;;  %v1583_v41 = vadd.f32 %v4325_v1, %v4480_v57  ;;  %v1660_v48 = vpack.c.bf16 %v1628_v49, %v1628_v49 }
 0x1b2   : > { %v1629_v23 = vmax.f32 %v1590_v45, 0.0 }
 0x1b3   : > { %v1878_v30 = vunpack.c.l.b16 %v1305_v59  ;;  %v1626_v21 = vmax.f32 %v1583_v41, 0.0  ;;  %v4555_v59 = vpop.f32.mrf.mxu0 }
 0x1b4   : > { %v1661_v39 = vpack.c.bf16 %v1629_v23, %v1629_v23 }
 0x1b5   : > { %v1900_v36 = vpack.c.b16 %v1879_v52, %v1878_v30  ;;  %v1658_v53 = vpack.c.bf16 %v1626_v21, %v1626_v21 }
 0x1b7   : > { %v1592_v24 = vpop.f32.mrf.mxu3 }
 0x1b8   : > { %2494 = vmatmul.bf16.gmra.mxu2 %v4256_v42 }
 0x1b9   : > { %2583 = vmatmul.bf16.gmra.mxu3 %v4258_v40  ;;  %v4545_v26 = vpop.f32.mrf.mxu2 }
 0x1bf   : > { %2677 = vmatmul.bf16.gmra.mxu0 %v1899_v12  ;;  %v1594_v20 = vpop.f32.mrf.mxu3  ;;  %v1979_v12 = vunpack.c.l.b16 %v1659_v35 }
 0x1c1   : > { %2726 = vmatmul.bf16.gmra.mxu1 %v4235_v31  ;;  %v4539_v31 = vld [vmem:[%s4840_s6] ss:$0 sm:$0xff] }
 0x1c2   : > { %v1229_v42 = vadd.f32 %v4539_v31, %v4419_v28  ;;  %v1231_v40 = vadd.f32 %v4539_v31, %v4441_v11  ;;  %v1978_v11 = vunpack.c.l.b16 %v1658_v53  ;;  %v1241_v53 = vadd.f32 %v4539_v31, %v4512_v16 }
 0x1c4   : > { %v1275_v57 = vmax.f32 %v1229_v42, 0.0  ;;  %v1276_v17 = vmax.f32 %v1231_v40, 0.0  ;;  %v4550_v63 = vpack.c.b16 %v1979_v12, %v1978_v11  ;;  %v4566_v42 = vpop.f32.mrf.mxu0  ;;  %v1980_v40 = vunpack.c.l.b16 %v1660_v48 }
 0x1c6   : > { %v1307_v28 = vpack.c.bf16 %v1275_v57, %v1275_v57  ;;  %v1308_v0 = vpack.c.bf16 %v1276_v17, %v1276_v17  ;;  %v1593_v57 = vadd.f32 %v4325_v1, %v1592_v24 }
 0x1c7   : > { %v1597_v62 = vpop.f32.mrf.mxu3 }
 0x1c8   : > { %2499 = vmatmul.bf16.gmra.mxu2 %v4285_v60  ;;  %v1880_v2 = vunpack.c.l.b16 %v1307_v28  ;;  %v1881_v3 = vunpack.c.l.b16 %v1308_v0  ;;  %v4557_v60 = vpop.f32.mrf.mxu2  ;;  %v1630_v28 = vmax.f32 %v1593_v57, 0.0 }
 0x1c9   : > { %2588 = vmatmul.bf16.gmra.mxu3 %v4287_v50  ;;  %v1236_v50 = vadd.f32 %v4539_v31, %v4484_v19 }
 0x1ca   : > { %v1901_v4 = vpack.c.b16 %v1881_v3, %v1880_v2  ;;  %v1280_v2 = vmax.f32 %v1241_v53, 0.0 }
 0x1cb   : > { %v1278_v52 = vmax.f32 %v1236_v50, 0.0 }
 0x1cc   : > { %v4580_v11 = vpop.f32.mrf.mxu0  ;;  %v1312_v16 = vpack.c.bf16 %v1280_v2, %v1280_v2 }
 0x1cf   : > { %2682 = vmatmul.bf16.gmra.mxu0 %v1900_v36  ;;  %v1599_v41 = vpop.f32.mrf.mxu3  ;;  %v1981_v36 = vunpack.c.l.b16 %v1661_v39 }
 0x1d0   : > { %v4568_v19 = vpop.f32.mrf.mxu2 }
 0x1d1   : > { %2731 = vmatmul.bf16.gmra.mxu1 %v4266_v34  ;;  %v1234_v34 = vadd.f32 %v4539_v31, %v4462_v18  ;;  %v1310_v18 = vpack.c.bf16 %v1278_v52, %v1278_v52  ;;  %v4572_v17 = vpack.c.b16 %v1981_v36, %v1980_v40  ;;  %v1246_v52 = vadd.f32 %v4539_v31, %v4529_v51 }
 0x1d3   : > { %v1277_v30 = vmax.f32 %v1234_v34, 0.0  ;;  %v1883_v22 = vunpack.c.l.b16 %v1310_v18  ;;  %v1282_v36 = vmax.f32 %v1246_v52, 0.0 }
 0x1d4   : > { %v4589_v49 = vpop.f32.mrf.mxu0 }
 0x1d5   : > { %v1309_v54 = vpack.c.bf16 %v1277_v30, %v1277_v30 }
 0x1d7   : > { %v1882_v21 = vunpack.c.l.b16 %v1309_v54 }
 0x1d8   : > { %2504 = vmatmul.bf16.gmra.mxu2 %v4314_v5  ;;  %v1595_v5 = vadd.f32 %v4325_v1, %v1594_v20  ;;  %v4582_v12 = vpop.f32.mrf.mxu2  ;;  %v1662_v20 = vpack.c.bf16 %v1630_v28, %v1630_v28 }
 0x1d9   : > { %2593 = vmatmul.bf16.gmra.mxu3 %v4316_v61  ;;  %v4574_v61 = vpop.f32.mrf.mxu3  ;;  %v1902_v35 = vpack.c.b16 %v1883_v22, %v1882_v21  ;;  %v1314_v21 = vpack.c.bf16 %v1282_v36, %v1282_v36 }
 0x1da   : > { %v1631_v0 = vmax.f32 %v1595_v5, 0.0  ;;  %v1982_v45 = vunpack.c.l.b16 %v1662_v20 }
 0x1dc   : > { %v1663_v3 = vpack.c.bf16 %v1631_v0, %v1631_v0 }
 0x1de   : > { %v1983_v34 = vunpack.c.l.b16 %v1663_v3 }
 0x1df   : > { %2687 = vmatmul.bf16.gmra.mxu0 %v1901_v4  ;;  %v1885_v4 = vunpack.c.l.b16 %v1312_v16 }
 0x1e0   : > { %v4591_v23 = vpop.f32.mrf.mxu2  ;;  %v4595_v30 = vpack.c.b16 %v1983_v34, %v1982_v45 }
 0x1e1   : > { %2736 = vmatmul.bf16.gmra.mxu1 %v4295_v43  ;;  %v1239_v43 = vadd.f32 %v4539_v31, %v4499_v56  ;;  %v4587_v14 = vpop.f32.mrf.mxu3 }
 0x1e3   : > { %v1279_v24 = vmax.f32 %v1239_v43, 0.0  ;;  %v1887_v43 = vunpack.c.l.b16 %v1314_v21 }
 0x1e5   : > { %v1311_v56 = vpack.c.bf16 %v1279_v24, %v1279_v24 }
 0x1e7   : > { %v1884_v50 = vunpack.c.l.b16 %v1311_v56 }
 0x1e8   : > { %2509 = vmatmul.bf16.gmra.mxu2 %v4348_v6  ;;  %v1598_v6 = vadd.f32 %v4325_v1, %v1597_v62 }
 0x1e9   : > { %2598 = vmatmul.bf16.gmra.mxu3 %v4350_v32  ;;  %v1600_v32 = vadd.f32 %v4325_v1, %v1599_v41  ;;  %v1903_v48 = vpack.c.b16 %v1885_v4, %v1884_v50  ;;  %v4601_v18 = vpop.f32.mrf.mxu3  ;;  %v4605_v41 = vpop.f32.mrf.mxu0 }
 0x1ea   : > { %v1632_v39 = vmax.f32 %v1598_v6, 0.0 }
 0x1eb   : > { %v1633_v54 = vmax.f32 %v1600_v32, 0.0 }
 0x1ec   : > { %v1664_v1 = vpack.c.bf16 %v1632_v39, %v1632_v39 }
 0x1ed   : > { %v1665_v62 = vpack.c.bf16 %v1633_v54, %v1633_v54 }
 0x1ee   : > { %v1984_v22 = vunpack.c.l.b16 %v1664_v1 }
 0x1ef   : > { %2692 = vmatmul.bf16.gmra.mxu0 %v1902_v35  ;;  %v1985_v57 = vunpack.c.l.b16 %v1665_v62 }
 0x1f1   : > { %2741 = vmatmul.bf16.gmra.mxu1 %v4331_v27  ;;  %v1244_v27 = vadd.f32 %v4539_v31, %v4524_v38  ;;  %v4608_v38 = vpop.f32.mrf.mxu2  ;;  %v4610_v53 = vpop.f32.mrf.mxu3  ;;  %v4612_v35 = vpack.c.b16 %v1985_v57, %v1984_v22 }
 0x1f2   : > { %v4618_v28 = vpop.f32.mrf.mxu0 }
 0x1f3   : > { %v1281_v40 = vmax.f32 %v1244_v27, 0.0 }
 0x1f5   : > { %v1313_v51 = vpack.c.bf16 %v1281_v40, %v1281_v40 }
 0x1f7   : > { %v1886_v5 = vunpack.c.l.b16 %v1313_v51 }
 0x1f8   : > { %2514 = vmatmul.bf16.gmra.mxu2 %v4393_v10  ;;  %v1249_v10 = vadd.f32 %v4539_v31, %v4545_v26 }
 0x1f9   : > { %2603 = vmatmul.bf16.gmra.mxu3 %v4395_v37  ;;  %v1251_v37 = vadd.f32 %v4539_v31, %v4557_v60  ;;  %v4620_v0 = vpop.f32.mrf.mxu2  ;;  %v4625_v20 = vpop.f32.mrf.mxu3 }
 0x1fa   : > { %v1283_v24 = vmax.f32 %v1249_v10, 0.0  ;;  %v4627_v56 = vpop.f32.mrf.mxu0 }
 0x1fb   : > { %v1284_v2 = vmax.f32 %v1251_v37, 0.0 }
 0x1fc   : > { %v1315_v26 = vpack.c.bf16 %v1283_v24, %v1283_v24 }
 0x1fd   : > { %v1316_v3 = vpack.c.bf16 %v1284_v2, %v1284_v2 }
 0x1fe   : > { %v1888_v60 = vunpack.c.l.b16 %v1315_v26 }
 0x1ff   : > { %2697 = vmatmul.bf16.gmra.mxu0 %v1903_v48  ;;  %v1889_v16 = vunpack.c.l.b16 %v1316_v3  ;;  %v4658_v48 = vld [vmem:[%s4846_s12] ss:$0 sm:$0xff] }
 0x201   : > { %2746 = vmatmul.bf16.gmra.mxu1 %v4360_v47  ;;  %v1904_v47 = vpack.c.b16 %v1887_v43, %v1886_v5  ;;  %v4629_v31 = vpop.f32.mrf.mxu2  ;;  %v1905_v45 = vpack.c.b16 %v1889_v16, %v1888_v60  ;;  %v4631_v34 = vpop.f32.mrf.mxu3 }
 0x202   : > { %v4633_v50 = vpop.f32.mrf.mxu0 }
 0x208   : > { %2519 = vmatmul.bf16.gmra.mxu2 %v4427_v13 }
 0x209   : > { %2608 = vmatmul.bf16.gmra.mxu3 %v4429_v25  ;;  %v4635_v13 = vpop.f32.mrf.mxu2 }
 0x20a   : > { %v4679_v62 = vpop.f32.mrf.mxu0 }
 0x20f   : > { %2702 = vmatmul.bf16.gmra.mxu0 %v1904_v47 }
 0x211   : > { %2751 = vmatmul.bf16.gmra.mxu1 %v4403_v44  ;;  %v4640_v44 = vpop.f32.mrf.mxu3  ;;  %v4646_v32 = vpop.f32.mrf.mxu2 }
 0x218   : > { %2524 = vmatmul.bf16.gmra.mxu2 %v4464_v55 }
 0x219   : > { %2613 = vmatmul.bf16.gmra.mxu3 %v4466_v8  ;;  %v4652_v8 = vpop.f32.mrf.mxu3 }
 0x21f   : > { %2707 = vmatmul.bf16.gmra.mxu0 %v1905_v45 }
 0x221   : > { %2756 = vmatmul.bf16.gmra.mxu1 %v4439_v15 }
 0x226   : > { %v2250_v25 = vpop.f32.mrf.mxu1 }
 0x227   : > { %v4642_v4 = vperm.slane %v2250_v25, 0 }
 0x228   : > { %2529 = vmatmul.bf16.gmra.mxu2 %v4491_v33 }
 0x229   : > { %v2456_v6 = vadd.f32 %v4568_v19, %v4642_v4  ;;  %v2458_v55 = vadd.f32 %v4582_v12, %v4642_v4  ;;  %2618 = vmatmul.bf16.gmra.mxu3 %v4493_v46  ;;  %v4666_v12 = vpop.f32.mrf.mxu2  ;;  %v2461_v39 = vadd.f32 %v4591_v23, %v4642_v4  ;;  %v2466_v10 = vadd.f32 %v4620_v0, %v4642_v4 }
 0x22b   : > { %v2545_v27 = vadd.f32 %v4574_v61, %v2456_v6  ;;  %v2547_v19 = vadd.f32 %v4587_v14, %v2458_v55  ;;  %v4677_v14 = vpop.f32.mrf.mxu3 }
 0x22d   : > { %v2634_v15 = vadd.f32 %v4555_v59, %v2545_v27  ;;  %v2636_v54 = vadd.f32 %v4566_v42, %v2547_v19  ;;  %v2463_v42 = vadd.f32 %v4608_v38, %v4642_v4  ;;  %v2471_v27 = vadd.f32 %v4635_v13, %v4642_v4 }
 0x22e   : > { %v2722_v52 = vpop.f32.mrf.mxu1 }
 0x22f   : > { %v2723_v61 = vadd.f32 %v2722_v52, %v2634_v15  ;;  %v2552_v57 = vadd.f32 %v4610_v53, %v2463_v42  ;;  %v2555_v53 = vadd.f32 %v4625_v20, %v2466_v10  ;;  %v2560_v15 = vadd.f32 %v4640_v44, %v2471_v27 }
 0x231   : > { %2761 = vmatmul.bf16.gmra.mxu1 %v4474_v58  ;;  %v2806_v59 = vadd.f32 %v4658_v48, %v2723_v61  ;;  %v2550_v58 = vadd.f32 %v4601_v18, %v2461_v39  ;;  %v2477_v51 = vpop.f32.mrf.mxu2  ;;  %v2641_v38 = vadd.f32 %v4589_v49, %v2552_v57  ;;  %v2644_v0 = vadd.f32 %v4605_v41, %v2555_v53 }
 0x232   : > { %v2649_v13 = vadd.f32 %v4627_v56, %v2560_v15 }
 0x233   : > { %v2838_v40 = vmax.f32 %v2806_v59, 0.0  ;;  %v2639_v23 = vadd.f32 %v4580_v11, %v2550_v58  ;;  %v2566_v43 = vpop.f32.mrf.mxu3  ;;  %v4692_v11 = vpop.f32.mrf.mxu0  ;;  %v2476_v58 = vadd.f32 %v4666_v12, %v4642_v4 }
 0x235   : > { %2870 = vst [vmem:[%s4672_s9] sm:$0xff] %v2838_v40  ;;  %v2565_v42 = vadd.f32 %v4677_v14, %v2476_v58 }
 0x236   : > { %v2724_v33 = vpop.f32.mrf.mxu1 }
 0x237   : > { %v2725_v36 = vadd.f32 %v2724_v33, %v2636_v54 }
 0x239   : > { %v2807_v46 = vadd.f32 %v4658_v48, %v2725_v36  ;;  %v2480_v24 = vpop.f32.mrf.mxu2 }
 0x23b   : > { %v2839_v1 = vmax.f32 %v2807_v46, 0.0  ;;  %v2569_v3 = vpop.f32.mrf.mxu3  ;;  %v2658_v16 = vpop.f32.mrf.mxu0 }
 0x23d   : > { %2871 = vst [vmem:[%s4672_s9 + $0x8] sm:$0xff] %v2839_v1 }
 0x23e   : > { %v2727_v21 = vpop.f32.mrf.mxu1 }
 0x23f   : > { %v2728_v22 = vadd.f32 %v2727_v21, %v2639_v23 }
 0x241   : > { %v2808_v18 = vadd.f32 %v4658_v48, %v2728_v22  ;;  %2766 = vmatmul.bf16.gmra.mxu1 %v4501_v7  ;;  %v2468_v7 = vadd.f32 %v4629_v31, %v4642_v4  ;;  %v2482_v20 = vpop.f32.mrf.mxu2  ;;  %v2654_v22 = vadd.f32 %v4679_v62, %v2565_v42 }
 0x243   : > { %v2840_v5 = vmax.f32 %v2808_v18, 0.0  ;;  %v2557_v45 = vadd.f32 %v4631_v34, %v2468_v7  ;;  %v2571_v52 = vpop.f32.mrf.mxu3  ;;  %v2660_v19 = vpop.f32.mrf.mxu0 }
 0x245   : > { %2872 = vst [vmem:[%s4672_s9 + $0x10] sm:$0xff] %v2840_v5  ;;  %v2646_v31 = vadd.f32 %v4618_v28, %v2557_v45 }
 0x246   : > { %v2729_v37 = vpop.f32.mrf.mxu1 }
 0x247   : > { %v2730_v47 = vadd.f32 %v2729_v37, %v2641_v38  ;;  %v2481_v38 = vadd.f32 %v2480_v24, %v4642_v4 }
 0x249   : > { %v2809_v2 = vadd.f32 %v4658_v48, %v2730_v47  ;;  %v2485_v59 = vpop.f32.mrf.mxu2 }
 0x24a   : > { %v2486_v27 = vadd.f32 %v2485_v59, %v4642_v4 }
 0x24b   : > { %v2841_v26 = vmax.f32 %v2809_v2, 0.0  ;;  %v2574_v44 = vpop.f32.mrf.mxu3  ;;  %v2663_v36 = vpop.f32.mrf.mxu0  ;;  %v2570_v2 = vadd.f32 %v2569_v3, %v2481_v38 }
 0x24d   : > { %2873 = vst [vmem:[%s4672_s9 + $0x18] sm:$0xff] %v2841_v26 }
 0x24e   : > { %v2732_v60 = vpop.f32.mrf.mxu1 }
 0x24f   : > { %v2733_v49 = vadd.f32 %v2732_v60, %v2644_v0  ;;  %v2483_v0 = vadd.f32 %v2482_v20, %v4642_v4 }
 0x251   : > { %v2810_v25 = vadd.f32 %v4658_v48, %v2733_v49  ;;  %2771 = vmatmul.bf16.gmra.mxu1 %v4518_v29  ;;  %v2473_v29 = vadd.f32 %v4646_v32, %v4642_v4  ;;  %v2487_v46 = vpop.f32.mrf.mxu2  ;;  %v2572_v45 = vadd.f32 %v2571_v52, %v2483_v0 }
 0x253   : > { %v2842_v6 = vmax.f32 %v2810_v25, 0.0  ;;  %v2562_v28 = vadd.f32 %v4652_v8, %v2473_v29  ;;  %v2576_v21 = vpop.f32.mrf.mxu3  ;;  %v2665_v12 = vpop.f32.mrf.mxu0 }
 0x255   : > { %2874 = vst [vmem:[%s4672_s9 + $0x20] sm:$0xff] %v2842_v6  ;;  %v2651_v32 = vadd.f32 %v4633_v50, %v2562_v28 }
 0x256   : > { %v2734_v41 = vpop.f32.mrf.mxu1 }
 0x257   : > { %v2735_v55 = vadd.f32 %v2734_v41, %v2646_v31  ;;  %v2661_v31 = vadd.f32 %v2660_v19, %v2572_v45 }
 0x259   : > { %v2811_v34 = vadd.f32 %v4658_v48, %v2735_v55  ;;  %v2490_v5 = vpop.f32.mrf.mxu2  ;;  %v2575_v55 = vadd.f32 %v2574_v44, %v2486_v27 }
 0x25b   : > { %v2843_v61 = vmax.f32 %v2811_v34, 0.0  ;;  %v2668_v62 = vpop.f32.mrf.mxu0  ;;  %v2488_v34 = vadd.f32 %v2487_v46, %v4642_v4 }
 0x25d   : > { %2875 = vst [vmem:[%s4672_s9 + $0x28] sm:$0xff] %v2843_v61 }
 0x25e   : > { %v2737_v39 = vpop.f32.mrf.mxu1 }
 0x25f   : > { %v2738_v54 = vadd.f32 %v2737_v39, %v2649_v13 }
 0x261   : > { %v2812_v40 = vadd.f32 %v4658_v48, %v2738_v54  ;;  %2776 = vmatmul.bf16.gmra.mxu1 %v4534_v9  ;;  %v2478_v9 = vadd.f32 %v2477_v51, %v4642_v4  ;;  %v2579_v51 = vpop.f32.mrf.mxu3  ;;  %v2577_v54 = vadd.f32 %v2576_v21, %v2488_v34 }
 0x263   : > { %v2844_v33 = vmax.f32 %v2812_v40, 0.0  ;;  %v2567_v50 = vadd.f32 %v2566_v43, %v2478_v9  ;;  %v2492_v43 = vpop.f32.mrf.mxu2  ;;  %v2670_v25 = vpop.f32.mrf.mxu0  ;;  %v2491_v40 = vadd.f32 %v2490_v5, %v4642_v4  ;;  %v2666_v44 = vadd.f32 %v2665_v12, %v2577_v54 }
 0x264   : > { %v2493_v42 = vadd.f32 %v2492_v43, %v4642_v4 }
 0x265   : > { %2876 = vst [vmem:[%s4672_s9 + $0x30] sm:$0xff] %v2844_v33  ;;  %v2656_v37 = vadd.f32 %v4692_v11, %v2567_v50 }
 0x266   : > { %v2739_v56 = vpop.f32.mrf.mxu1 }
 0x267   : > { %v2740_v1 = vadd.f32 %v2739_v56, %v2651_v32 }
 0x269   : > { %v2813_v8 = vadd.f32 %v4658_v48, %v2740_v1  ;;  %v2581_v24 = vpop.f32.mrf.mxu3 }
 0x26a   : > { %v2582_v9 = vadd.f32 %v2581_v24, %v2493_v42 }
 0x26b   : > { %v2845_v23 = vmax.f32 %v2813_v8, 0.0  ;;  %v2495_v6 = vpop.f32.mrf.mxu2  ;;  %v2673_v61 = vpop.f32.mrf.mxu0 }
 0x26c   : > { %v2496_v5 = vadd.f32 %v2495_v6, %v4642_v4  ;;  %v2671_v50 = vadd.f32 %v2670_v25, %v2582_v9 }
 0x26d   : > { %2877 = vst [vmem:[%s4672_s9 + $0x38] sm:$0xff] %v2845_v23 }
 0x26e   : > { %v2742_v57 = vpop.f32.mrf.mxu1 }
 0x26f   : > { %v2743_v18 = vadd.f32 %v2742_v57, %v2654_v22 }
 0x271   : > { %v2814_v10 = vadd.f32 %v4658_v48, %v2743_v18  ;;  %2781 = vmatmul.bf16.gmra.mxu1 %v4550_v63  ;;  %v2659_v63 = vadd.f32 %v2658_v16, %v2570_v2  ;;  %v2584_v15 = vpop.f32.mrf.mxu3 }
 0x273   : > { %v2846_v14 = vmax.f32 %v2814_v10, 0.0  ;;  %v2497_v29 = vpop.f32.mrf.mxu2  ;;  %v2675_v58 = vpop.f32.mrf.mxu0 }
 0x274   : > { %v2498_v2 = vadd.f32 %v2497_v29, %v4642_v4 }
 0x275   : > { %2878 = vst [vmem:[%s4672_s9 + $0x40] sm:$0xff] %v2846_v14 }
 0x276   : > { %v2744_v47 = vpop.f32.mrf.mxu1 }
 0x277   : > { %v2745_v53 = vadd.f32 %v2744_v47, %v2656_v37  ;;  %v2585_v37 = vadd.f32 %v2584_v15, %v2496_v5 }
 0x279   : > { %v2815_v26 = vadd.f32 %v4658_v48, %v2745_v53  ;;  %v2586_v28 = vpop.f32.mrf.mxu3 }
 0x27b   : > { %v2847_v7 = vmax.f32 %v2815_v26, 0.0  ;;  %v2500_v46 = vpop.f32.mrf.mxu2  ;;  %v2678_v22 = vpop.f32.mrf.mxu0 }
 0x27c   : > { %v2501_v24 = vadd.f32 %v2500_v46, %v4642_v4 }
 0x27d   : > { %2879 = vst [vmem:[%s4672_s9 + $0x48] sm:$0xff] %v2847_v7  ;;  %v2587_v7 = vadd.f32 %v2586_v28, %v2498_v2 }
 0x27e   : > { %v2747_v60 = vpop.f32.mrf.mxu1 }
 0x27f   : > { %v2748_v49 = vadd.f32 %v2747_v60, %v2659_v63  ;;  %v2676_v45 = vadd.f32 %v2675_v58, %v2587_v7 }
 0x281   : > { %v2816_v11 = vadd.f32 %v4658_v48, %v2748_v49  ;;  %2786 = vmatmul.bf16.gmra.mxu1 %v4572_v17  ;;  %v2664_v17 = vadd.f32 %v2663_v36, %v2575_v55  ;;  %v2580_v36 = vadd.f32 %v2579_v51, %v2491_v40 }
 0x283   : > { %v2848_v3 = vmax.f32 %v2816_v11, 0.0  ;;  %v2669_v8 = vadd.f32 %v2668_v62, %v2580_v36  ;;  %v2502_v12 = vpop.f32.mrf.mxu2  ;;  %v2680_v47 = vpop.f32.mrf.mxu0 }
 0x285   : > { %2880 = vst [vmem:[%s4672_s9 + $0x50] sm:$0xff] %v2848_v3 }
 0x286   : > { %v2749_v41 = vpop.f32.mrf.mxu1 }
 0x287   : > { %v2750_v20 = vadd.f32 %v2749_v41, %v2661_v31 }
 0x289   : > { %v2817_v16 = vadd.f32 %v4658_v48, %v2750_v20  ;;  %v2503_v20 = vadd.f32 %v2502_v12, %v4642_v4 }
 0x28b   : > { %v2849_v52 = vmax.f32 %v2817_v16, 0.0  ;;  %v2505_v62 = vpop.f32.mrf.mxu2  ;;  %v2683_v49 = vpop.f32.mrf.mxu0 }
 0x28d   : > { %2881 = vst [vmem:[%s4672_s9 + $0x58] sm:$0xff] %v2849_v52 }
 0x28e   : > { %v2752_v13 = vpop.f32.mrf.mxu1 }
 0x28f   : > { %v2753_v39 = vadd.f32 %v2752_v13, %v2664_v17  ;;  %v2506_v13 = vadd.f32 %v2505_v62, %v4642_v4 }
 0x291   : > { %v2818_v19 = vadd.f32 %v4658_v48, %v2753_v39  ;;  %2791 = vmatmul.bf16.gmra.mxu1 %v4595_v30  ;;  %v2589_v30 = vpop.f32.mrf.mxu3 }
 0x292   : > { %v2590_v6 = vadd.f32 %v2589_v30, %v2501_v24 }
 0x293   : > { %v2850_v59 = vmax.f32 %v2818_v19, 0.0  ;;  %v2507_v11 = vpop.f32.mrf.mxu2  ;;  %v2685_v15 = vpop.f32.mrf.mxu0 }
 0x294   : > { %v2679_v55 = vadd.f32 %v2678_v22, %v2590_v6 }
 0x295   : > { %2882 = vst [vmem:[%s4672_s9 + $0x60] sm:$0xff] %v2850_v59 }
 0x296   : > { %v2754_v33 = vpop.f32.mrf.mxu1 }
 0x297   : > { %v2755_v32 = vadd.f32 %v2754_v33, %v2666_v44 }
 0x299   : > { %v2819_v56 = vadd.f32 %v4658_v48, %v2755_v32  ;;  %v2591_v38 = vpop.f32.mrf.mxu3  ;;  %v2508_v32 = vadd.f32 %v2507_v11, %v4642_v4 }
 0x29b   : > { %v2851_v1 = vmax.f32 %v2819_v56, 0.0  ;;  %v2510_v34 = vpop.f32.mrf.mxu2  ;;  %v2688_v28 = vpop.f32.mrf.mxu0 }
 0x29c   : > { %v2511_v9 = vadd.f32 %v2510_v34, %v4642_v4 }
 0x29d   : > { %2883 = vst [vmem:[%s4672_s9 + $0x68] sm:$0xff] %v2851_v1 }
 0x29e   : > { %v2757_v23 = vpop.f32.mrf.mxu1 }
 0x29f   : > { %v2758_v21 = vadd.f32 %v2757_v23, %v2669_v8 }
 0x2a1   : > { %v2820_v57 = vadd.f32 %v4658_v48, %v2758_v21  ;;  %2796 = vmatmul.bf16.gmra.mxu1 %v4612_v35  ;;  %v2674_v35 = vadd.f32 %v2673_v61, %v2585_v37  ;;  %v2594_v63 = vpop.f32.mrf.mxu3  ;;  %v2592_v61 = vadd.f32 %v2591_v38, %v2503_v20 }
 0x2a2   : > { %v2595_v40 = vadd.f32 %v2594_v63, %v2506_v13 }
 0x2a3   : > { %v2852_v18 = vmax.f32 %v2820_v57, 0.0  ;;  %v2681_v39 = vadd.f32 %v2680_v47, %v2592_v61  ;;  %v2512_v33 = vpop.f32.mrf.mxu2  ;;  %v2690_v30 = vpop.f32.mrf.mxu0 }
 0x2a4   : > { %v2684_v46 = vadd.f32 %v2683_v49, %v2595_v40  ;;  %v2513_v38 = vadd.f32 %v2512_v33, %v4642_v4 }
 0x2a5   : > { %2884 = vst [vmem:[%s4672_s9 + $0x70] sm:$0xff] %v2852_v18 }
 0x2a6   : > { %v2759_v10 = vpop.f32.mrf.mxu1 }
 0x2a7   : > { %v2760_v14 = vadd.f32 %v2759_v10, %v2671_v50 }
 0x2a9   : > { %v2821_v51 = vadd.f32 %v4658_v48, %v2760_v14  ;;  %v2596_v41 = vpop.f32.mrf.mxu3 }
 0x2aa   : > { %v2597_v42 = vadd.f32 %v2596_v41, %v2508_v32 }
 0x2ab   : > { %v2853_v53 = vmax.f32 %v2821_v51, 0.0  ;;  %v2515_v21 = vpop.f32.mrf.mxu2  ;;  %v2693_v14 = vpop.f32.mrf.mxu0 }
 0x2ac   : > { %v2686_v22 = vadd.f32 %v2685_v15, %v2597_v42 }
 0x2ad   : > { %2885 = vst [vmem:[%s4672_s9 + $0x78] sm:$0xff] %v2853_v53 }
 0x2ae   : > { %v2762_v26 = vpop.f32.mrf.mxu1 }
 0x2af   : > { %v2763_v43 = vadd.f32 %v2762_v26, %v2674_v35 }
 0x2b1   : > { %v2822_v0 = vadd.f32 %v4658_v48, %v2763_v43  ;;  %v2599_v54 = vpop.f32.mrf.mxu3  ;;  %v2516_v43 = vadd.f32 %v2515_v21, %v4642_v4 }
 0x2b2   : > { %v2600_v18 = vadd.f32 %v2599_v54, %v2511_v9 }
 0x2b3   : > { %v2854_v60 = vmax.f32 %v2822_v0, 0.0  ;;  %v2517_v51 = vpop.f32.mrf.mxu2  ;;  %v2695_v63 = vpop.f32.mrf.mxu0 }
 0x2b4   : > { %v2689_v37 = vadd.f32 %v2688_v28, %v2600_v18 }
 0x2b5   : > { %2886 = vst [vmem:[%s4672_s9 + $0x80] sm:$0xff] %v2854_v60 }
 0x2b6   : > { %v2764_v25 = vpop.f32.mrf.mxu1 }
 0x2b7   : > { %v2765_v3 = vadd.f32 %v2764_v25, %v2676_v45  ;;  %v2518_v25 = vadd.f32 %v2517_v51, %v4642_v4 }
 0x2b9   : > { %v2823_v27 = vadd.f32 %v4658_v48, %v2765_v3  ;;  %v2601_v1 = vpop.f32.mrf.mxu3 }
 0x2ba   : > { %v2602_v62 = vadd.f32 %v2601_v1, %v2513_v38 }
 0x2bb   : > { %v2855_v31 = vmax.f32 %v2823_v27, 0.0  ;;  %v2520_v49 = vpop.f32.mrf.mxu2  ;;  %v2698_v41 = vpop.f32.mrf.mxu0 }
 0x2bc   : > { %v2691_v7 = vadd.f32 %v2690_v30, %v2602_v62 }
 0x2bd   : > { %2887 = vst [vmem:[%s4672_s9 + $0x88] sm:$0xff] %v2855_v31 }
 0x2be   : > { %v2767_v16 = vpop.f32.mrf.mxu1 }
 0x2bf   : > { %v2768_v52 = vadd.f32 %v2767_v16, %v2679_v55 }
 0x2c1   : > { %v2824_v17 = vadd.f32 %v4658_v48, %v2768_v52  ;;  %v2604_v50 = vpop.f32.mrf.mxu3  ;;  %v2521_v52 = vadd.f32 %v2520_v49, %v4642_v4 }
 0x2c2   : > { %v2605_v24 = vadd.f32 %v2604_v50, %v2516_v43 }
 0x2c3   : > { %v2856_v29 = vmax.f32 %v2824_v17, 0.0  ;;  %v2522_v16 = vpop.f32.mrf.mxu2  ;;  %v2700_v54 = vpop.f32.mrf.mxu0 }
 0x2c4   : > { %v2694_v3 = vadd.f32 %v2693_v14, %v2605_v24  ;;  %v2523_v28 = vadd.f32 %v2522_v16, %v4642_v4 }
 0x2c5   : > { %2888 = vst [vmem:[%s4672_s9 + $0x90] sm:$0xff] %v2856_v29 }
 0x2c6   : > { %v2769_v19 = vpop.f32.mrf.mxu1 }
 0x2c7   : > { %v2770_v59 = vadd.f32 %v2769_v19, %v2681_v39 }
 0x2c9   : > { %v2825_v44 = vadd.f32 %v4658_v48, %v2770_v59  ;;  %v2606_v26 = vpop.f32.mrf.mxu3 }
 0x2ca   : > { %v2607_v20 = vadd.f32 %v2606_v26, %v2518_v25 }
 0x2cb   : > { %v2857_v58 = vmax.f32 %v2825_v44, 0.0  ;;  %v2525_v59 = vpop.f32.mrf.mxu2 }
 0x2cc   : > { %v2696_v34 = vadd.f32 %v2695_v63, %v2607_v20  ;;  %v2526_v1 = vadd.f32 %v2525_v59, %v4642_v4 }
 0x2cd   : > { %2889 = vst [vmem:[%s4672_s9 + $0x98] sm:$0xff] %v2857_v58 }
 0x2ce   : > { %v2772_v36 = vpop.f32.mrf.mxu1 }
 0x2cf   : > { %v2773_v56 = vadd.f32 %v2772_v36, %v2684_v46 }
 0x2d1   : > { %v2826_v8 = vadd.f32 %v4658_v48, %v2773_v56  ;;  %v2609_v6 = vpop.f32.mrf.mxu3  ;;  %v2703_v56 = vpop.f32.mrf.mxu0 }
 0x2d2   : > { %v2610_v13 = vadd.f32 %v2609_v6, %v2521_v52 }
 0x2d3   : > { %v2858_v23 = vmax.f32 %v2826_v8, 0.0  ;;  %v2527_v8 = vpop.f32.mrf.mxu2 }
 0x2d4   : > { %v2699_v40 = vadd.f32 %v2698_v41, %v2610_v13 }
 0x2d5   : > { %2890 = vst [vmem:[%s4672_s9 + $0xa0] sm:$0xff] %v2858_v23 }
 0x2d6   : > { %v2774_v57 = vpop.f32.mrf.mxu1 }
 0x2d7   : > { %v2775_v12 = vadd.f32 %v2774_v57, %v2686_v22 }
 0x2d9   : > { %v2827_v5 = vadd.f32 %v4658_v48, %v2775_v12  ;;  %v2611_v29 = vpop.f32.mrf.mxu3  ;;  %v2528_v12 = vadd.f32 %v2527_v8, %v4642_v4 }
 0x2da   : > { %v2612_v58 = vadd.f32 %v2611_v29, %v2523_v28 }
 0x2db   : > { %v2859_v10 = vmax.f32 %v2827_v5, 0.0  ;;  %v2530_v14 = vpop.f32.mrf.mxu2 }
 0x2dc   : > { %v2701_v42 = vadd.f32 %v2700_v54, %v2612_v58 }
 0x2dd   : > { %2891 = vst [vmem:[%s4672_s9 + $0xa8] sm:$0xff] %v2859_v10  ;;  %v2705_v10 = vpop.f32.mrf.mxu0 }
 0x2de   : > { %v2777_v47 = vpop.f32.mrf.mxu1 }
 0x2df   : > { %v2778_v53 = vadd.f32 %v2777_v47, %v2689_v37  ;;  %v2531_v47 = vadd.f32 %v2530_v14, %v4642_v4 }
 0x2e1   : > { %v2828_v2 = vadd.f32 %v4658_v48, %v2778_v53  ;;  %v2614_v46 = vpop.f32.mrf.mxu3 }
 0x2e2   : > { %v2615_v21 = vadd.f32 %v2614_v46, %v2526_v1 }
 0x2e3   : > { %v2860_v35 = vmax.f32 %v2828_v2, 0.0 }
 0x2e4   : > { %v2704_v18 = vadd.f32 %v2703_v56, %v2615_v21 }
 0x2e5   : > { %2892 = vst [vmem:[%s4672_s9 + $0xb0] sm:$0xff] %v2860_v35 }
 0x2e6   : > { %v2779_v0 = vpop.f32.mrf.mxu1 }
 0x2e7   : > { %v2780_v60 = vadd.f32 %v2779_v0, %v2691_v7  ;;  %v2708_v7 = vpop.f32.mrf.mxu0  ;;  %v2532_v0 = vpop.f32.mrf.mxu2 }
 0x2e9   : > { %v2829_v45 = vadd.f32 %v4658_v48, %v2780_v60  ;;  %v2616_v57 = vpop.f32.mrf.mxu3  ;;  %v2533_v60 = vadd.f32 %v2532_v0, %v4642_v4 }
 0x2ea   : > { %v2617_v38 = vadd.f32 %v2616_v57, %v2528_v12 }
 0x2eb   : > { %v2861_v11 = vmax.f32 %v2829_v45, 0.0 }
 0x2ec   : > { %v2706_v53 = vadd.f32 %v2705_v10, %v2617_v38 }
 0x2ed   : > { %2893 = vst [vmem:[%s4672_s9 + $0xb8] sm:$0xff] %v2861_v11 }
 0x2ee   : > { %v2782_v27 = vpop.f32.mrf.mxu1 }
 0x2ef   : > { %v2783_v31 = vadd.f32 %v2782_v27, %v2694_v3  ;;  %v2710_v27 = vpop.f32.mrf.mxu0 }
 0x2f1   : > { %v2830_v55 = vadd.f32 %v4658_v48, %v2783_v31  ;;  %v2619_v62 = vpop.f32.mrf.mxu3 }
 0x2f2   : > { %v2620_v26 = vadd.f32 %v2619_v62, %v2531_v47 }
 0x2f3   : > { %v2862_v15 = vmax.f32 %v2830_v55, 0.0 }
 0x2f4   : > { %v2709_v49 = vadd.f32 %v2708_v7, %v2620_v26 }
 0x2f5   : > { %2894 = vst [vmem:[%s4672_s9 + $0xc0] sm:$0xff] %v2862_v15 }
 0x2f6   : > { %v2784_v61 = vpop.f32.mrf.mxu1 }
 0x2f7   : > { %v2785_v17 = vadd.f32 %v2784_v61, %v2696_v34 }
 0x2f9   : > { %v2831_v39 = vadd.f32 %v4658_v48, %v2785_v17  ;;  %v2621_v11 = vpop.f32.mrf.mxu3 }
 0x2fa   : > { %v2622_v25 = vadd.f32 %v2621_v11, %v2533_v60 }
 0x2fb   : > { %v2863_v19 = vmax.f32 %v2831_v39, 0.0 }
 0x2fc   : > { %v2711_v4 = vadd.f32 %v2710_v27, %v2622_v25 }
 0x2fd   : > { %2895 = vst [vmem:[%s4672_s9 + $0xc8] sm:$0xff] %v2863_v19 }
 0x2fe   : > { %v2787_v44 = vpop.f32.mrf.mxu1 }
 0x2ff   : > { %v2788_v33 = vadd.f32 %v2787_v44, %v2699_v40 }
 0x301   : > { %v2832_v32 = vadd.f32 %v4658_v48, %v2788_v33 }
 0x303   : > { %v2864_v36 = vmax.f32 %v2832_v32, 0.0 }
 0x305   : > { %2896 = vst [vmem:[%s4672_s9 + $0xd0] sm:$0xff] %v2864_v36 }
 0x306   : > { %v2789_v30 = vpop.f32.mrf.mxu1 }
 0x307   : > { %v2790_v23 = vadd.f32 %v2789_v30, %v2701_v42 }
 0x309   : > { %v2833_v9 = vadd.f32 %v4658_v48, %v2790_v23 }
 0x30b   : > { %v2865_v22 = vmax.f32 %v2833_v9, 0.0 }
 0x30d   : > { %2897 = vst [vmem:[%s4672_s9 + $0xd8] sm:$0xff] %v2865_v22 }
 0x30e   : > { %v2792_v5 = vpop.f32.mrf.mxu1 }
 0x30f   : > { %v2793_v50 = vadd.f32 %v2792_v5, %v2704_v18 }
 0x311   : > { %v2834_v37 = vadd.f32 %v4658_v48, %v2793_v50 }
 0x313   : > { %v2866_v51 = vmax.f32 %v2834_v37, 0.0 }
 0x315   : > { %2898 = vst [vmem:[%s4672_s9 + $0xe0] sm:$0xff] %v2866_v51 }
 0x316   : > { %v2794_v2 = vpop.f32.mrf.mxu1 }
 0x317   : > { %v2795_v35 = vadd.f32 %v2794_v2, %v2706_v53 }
 0x319   : > { %v2835_v43 = vadd.f32 %v4658_v48, %v2795_v35 }
 0x31b   : > { %v2867_v63 = vmax.f32 %v2835_v43, 0.0 }
 0x31d   : > { %2899 = vst [vmem:[%s4672_s9 + $0xe8] sm:$0xff] %v2867_v63 }
 0x31e   : > { %v2797_v24 = vpop.f32.mrf.mxu1 }
 0x31f   : > { %v2798_v45 = vadd.f32 %v2797_v24, %v2709_v49 }
 0x321   : > { %v2836_v3 = vadd.f32 %v4658_v48, %v2798_v45 }
 0x323   : > { %v2868_v6 = vmax.f32 %v2836_v3, 0.0 }
 0x325   : > { %2900 = vst [vmem:[%s4672_s9 + $0xf0] sm:$0xff] %v2868_v6 }
 0x326   : > { %v2799_v31 = vpop.f32.mrf.mxu1 }
 0x327   : > { %v2800_v41 = vadd.f32 %v2799_v31, %v2711_v4 }
 0x329   : > { %v2837_v20 = vadd.f32 %v4658_v48, %v2800_v41 }
 0x32b   : > { %v2869_v55 = vmax.f32 %v2837_v20, 0.0 }
 0x32d   : > { %2901 = vst [vmem:[%s4672_s9 + $0xf8] sm:$0xff] %v2869_v55 }
 0x32e   : > { %3610 = shalt.err (!%p3607_p3)
}
 0x32f   : > { %s3648_s27 = smov 128   ;;  %s3649_s9 = smov 8  }
 0x330   : > { %3534 = dma.vmem_to_hbm [thread:$0]  (%p3763_p5), %s2916_s25, 4096, %s2918_s15, %s2903_s17, %s3648_s27, %s3648_s27, %s3649_s9  }
 0x331 PF: > { %p3540_p4 = scmp.ge.s32.totalorder %s3645_s16, 2  ;;  %s2932_s20 = sand.u32 1, %s3633_s29  }
 0x332   : > { %s2933_s26 = scalar_lea.sflag [#allocation3], %s2932_s20 }
 0x333   : > { %p3537_p7 = pnand %p3540_p4, %p3767_p6 }
 0x335   : > { %p3538_p8 = pneg %p3537_p7 }
 0x337   : > { %3628 = dma.done.wait (%p3538_p8), %s2933_s26, 4096  }
 0x338   : > { %3630 = vsyncadd (%p3538_p8), %s2933_s26, 4294963200  ;;  %s4872_s22 = sld [smem:[#allocation5_spill]]  ;;  %p24_p9 = scmp.ge.s32.totalorder %s3750_s19, 4  }
 0x339   : > { %s4873_s15 = sld [smem:[#allocation6_spill]]  ;;  %s4874_s29 = smov %s3637_s30 }
 0x33a   : > { %s4876_s16 = smov %s3750_s19  ;;  %26 = sbr.rel (!%p24_p9) target bundleno = 7 (0x7), region = 117 }
 0x33e   : > { %s4875_s30 = smov %s4872_s22 }
 0x33f   :  { %2939 = vsyncpa [#allocation3], 1 }
 0x340   :  { %2941 = vsyncpa [#allocation3 + $0x1], 1 }

</bundles_post_ra>
